<compile_context>
chip_gen: v7x
topology: tpu7x:2x2x1
jax: 0.10.0
libtpu: 0.0.40
codegen_flags: <defaults>
</compile_context>

<pallas_src>
import jax
import jax.numpy as jnp
from jax.experimental import pallas as pl
from jax.experimental.pallas import tpu as pltpu

BN_EPS = 1e-5


# ---------------------------------------------------------------------------
# Math helpers.
# ---------------------------------------------------------------------------
def _bn_train(z, gamma, beta):
    """BatchNorm1d, training-mode semantics, one-pass statistics."""
    mean = jnp.mean(z, axis=0, keepdims=True)
    mean_sq = jnp.mean(z * z, axis=0, keepdims=True)
    var = jnp.maximum(mean_sq - mean * mean, 0.0)
    return (z - mean) * jax.lax.rsqrt(var + BN_EPS) * gamma + beta


def _mish_fast(z):
    """Mish via a single exp: tanh(softplus(z)) = n/(n+2), n = e^z*(e^z+2).

    Kernel-only (uses pl.reciprocal).  Clamp keeps exp finite; for z >= 20 the
    ratio is exactly 1.0 in f32, matching mish(z) ~= z.
    """
    e = jnp.exp(jnp.minimum(z, 20.0))
    n = e * (e + 2.0)
    return z * n * pl.reciprocal(n + 2.0, approx=True)


def _mish_ref(z):
    """Exact Mish (plain-JAX reference)."""
    return z * jnp.tanh(jnp.logaddexp(z, 0.0))


# ---------------------------------------------------------------------------
# Fused Dual_ResNet chain kernel.
# Per block operands: w1 (n_in,n_mid) bf16, bn1 (2,n_mid) f32 [gamma;beta],
#                     w2 (n_mid,n_out) bf16, bn2 (2|3,n_out) f32 [gamma;beta;b3],
#                     optional w3 (n_in,n_out) bf16.
# ---------------------------------------------------------------------------
def _dual_resnet_block(x, w1_ref, bn1_ref, w2_ref, bn2_ref, w3_ref):
    xb = x.astype(jnp.bfloat16)                       # MXU-native operand

    # fc1 (bias-free: absorbed by training-mode BN) -> BN1 -> Mish
    z1 = jnp.dot(xb, w1_ref[...], preferred_element_type=jnp.float32)
    h1 = _mish_fast(_bn_train(z1, bn1_ref[0:1, :], bn1_ref[1:2, :]))

    # fc2 (bias-free) -> BN2
    z2 = jnp.dot(h1.astype(jnp.bfloat16), w2_ref[...],
                 preferred_element_type=jnp.float32)
    z2 = _bn_train(z2, bn2_ref[0:1, :], bn2_ref[1:2, :])

    # skip path
    if w3_ref is None:
        skip = x                                      # identity (n_in == n_out)
    else:
        skip = (jnp.dot(xb, w3_ref[...], preferred_element_type=jnp.float32)
                + bn2_ref[2:3, :])                    # b3 packed as bn2 row 2

    return _mish_fast(z2 + skip)


def _make_chain_kernel(has_fc3_flags):
    n_params = sum(5 if f else 4 for f in has_fc3_flags)

    def kernel(*refs):
        # refs = (x_ref, *param_refs, o_ref)
        x_ref = refs[0]
        o_ref = refs[1 + n_params]
        prefs = refs[1:1 + n_params]

        h = x_ref[...].astype(jnp.float32)
        idx = 0
        for has_fc3 in has_fc3_flags:
            w1_ref, bn1_ref, w2_ref, bn2_ref = prefs[idx:idx + 4]
            idx += 4
            w3_ref = None
            if has_fc3:
                w3_ref = prefs[idx]
                idx += 1
            h = _dual_resnet_block(h, w1_ref, bn1_ref, w2_ref, bn2_ref, w3_ref)
        o_ref[...] = h.astype(o_ref.dtype)

    return kernel


def dual_resnet_chain_forward(params_list, x, out_dtype=jnp.float32):
    """Fuse a chain of Dual_ResNet blocks into a single pallas_call.

    x: (B, n_in) -> (B, n_out_of_last_block).  Whole batch + all weights are
    VMEM-resident; inter-block activations never touch HBM.
    """
    B, n_in = x.shape
    assert B >= 2, "training-mode BatchNorm requires batch size >= 2"

    ins = [x]
    has_fc3_flags = []
    flops = 0
    transcendentals = 0
    cur_in = n_in
    for p in params_list:
        assert p["w1"].shape[0] == cur_in, (p["w1"].shape, cur_in)
        n_mid = p["w1"].shape[1]
        n_out = p["w2"].shape[1]
        has_fc3 = "w3" in p
        has_fc3_flags.append(has_fc3)

        ins += [p["w1"], p["bn1"], p["w2"], p["bn2"]]
        if has_fc3:
            ins.append(p["w3"])

        flops += 2 * B * (cur_in * n_mid + n_mid * n_out
                          + (cur_in * n_out if has_fc3 else 0))
        transcendentals += B * (n_mid + n_out)        # one exp per Mish element
        cur_in = n_out
    n_final = cur_in

    bytes_accessed = (sum(int(a.size) * a.dtype.itemsize for a in ins)
                      + B * n_final * jnp.dtype(out_dtype).itemsize)
    # Whole-batch design: guard (roughly) against blowing past scoped VMEM.
    assert bytes_accessed < 32 * 1024 * 1024, (
        "batch too large for the un-tiled kernel; see TODO(synk) batch-tiled "
        "variant")

    kernel = _make_chain_kernel(tuple(has_fc3_flags))
    vmem_spec = pl.BlockSpec(memory_space=pltpu.MemorySpace.VMEM)

    return pl.pallas_call(
        kernel,
        out_shape=jax.ShapeDtypeStruct((B, n_final), out_dtype),
        in_specs=[vmem_spec] * len(ins),
        out_specs=vmem_spec,
        cost_estimate=pl.CostEstimate(
            flops=flops,
            transcendentals=transcendentals,
            bytes_accessed=bytes_accessed),
    )(*ins)


def dual_resnet_forward(params, x, out_dtype=jnp.float32):
    """Single Dual_ResNet block forward (== chain of length 1)."""
    return dual_resnet_chain_forward([params], x, out_dtype=out_dtype)


# ---------------------------------------------------------------------------
# Plain-JAX reference (same bf16-weight / f32-accumulate numerics, exact Mish).
# ---------------------------------------------------------------------------
def dual_resnet_reference(params, x):
    xb = x.astype(jnp.bfloat16)
    z1 = jnp.dot(xb, params["w1"], preferred_element_type=jnp.float32)
    h1 = _mish_ref(_bn_train(z1, params["bn1"][0:1, :], params["bn1"][1:2, :]))
    z2 = jnp.dot(h1.astype(jnp.bfloat16), params["w2"],
                 preferred_element_type=jnp.float32)
    z2 = _bn_train(z2, params["bn2"][0:1, :], params["bn2"][1:2, :])
    if "w3" in params:
        skip = (jnp.dot(xb, params["w3"], preferred_element_type=jnp.float32)
                + params["bn2"][2:3, :])
    else:
        skip = x.astype(jnp.float32)
    return _mish_ref(z2 + skip)


# ---------------------------------------------------------------------------
# Deterministic synthetic parameters (mirrors Dual_ResNet.__init__ shapes).
# Weights stored once: transposed to (in, out), bf16.  BN affine params and b3
# packed into small f32 matrices.  fc1/fc2 biases omitted (no-ops under
# training-mode BN).
# ---------------------------------------------------------------------------
def init_dual_resnet_params(key, n_in, n_out):
    n_mid = (n_in + n_out) // 2
    k = jax.random.split(key, 4)

    def kaiming(kk, fan_in, fan_out):
        return (jax.random.normal(kk, (fan_in, fan_out), jnp.float32)
                * jnp.sqrt(2.0 / fan_in))

    def default_w(kk, fan_in, fan_out):
        bound = 1.0 / jnp.sqrt(jnp.float32(fan_in))
        return jax.random.uniform(kk, (fan_in, fan_out), jnp.float32,
                                  -bound, bound)

    def default_b(kk, fan_in, fan_out):
        bound = 1.0 / jnp.sqrt(jnp.float32(fan_in))
        return jax.random.uniform(kk, (1, fan_out), jnp.float32, -bound, bound)

    p = {
        "w1": kaiming(k[0], n_in, n_mid).astype(jnp.bfloat16),
        "w2": kaiming(k[1], n_mid, n_out).astype(jnp.bfloat16),
        # bn1 rows: [gamma1; beta1]
        "bn1": jnp.concatenate([jnp.ones((1, n_mid), jnp.float32),
                                jnp.zeros((1, n_mid), jnp.float32)], axis=0),
    }
    if n_in != n_out:
        p["w3"] = default_w(k[2], n_in, n_out).astype(jnp.bfloat16)
        # bn2 rows: [gamma2; beta2; b3]
        p["bn2"] = jnp.concatenate([jnp.ones((1, n_out), jnp.float32),
                                    jnp.zeros((1, n_out), jnp.float32),
                                    default_b(k[3], n_in, n_out)], axis=0)
    else:
        # bn2 rows: [gamma2; beta2]
        p["bn2"] = jnp.concatenate([jnp.ones((1, n_out), jnp.float32),
                                    jnp.zeros((1, n_out), jnp.float32)], axis=0)
    return p


# ---------------------------------------------------------------------------
if __name__ == "__main__":
    key = jax.random.PRNGKey(0)
    kp_a, kp_b, kx = jax.random.split(key, 3)

    B = 8
    # Block A exercises the projection-skip path (n_in != n_out -> fc3).
    params_a = init_dual_resnet_params(kp_a, n_in=512, n_out=256)
    # Block B exercises the identity-skip path (n_in == n_out).
    params_b = init_dual_resnet_params(kp_b, n_in=256, n_out=256)

    x = jax.random.normal(kx, (B, 512), jnp.float32)

    # Both blocks fused into ONE pallas_call (inter-block activation never
    # leaves VMEM); jit keeps the whole forward in a single XLA program.
    chain = jax.jit(lambda xx: dual_resnet_chain_forward([params_a, params_b], xx))
    y = jax.block_until_ready(chain(x))
    assert y.shape == (B, 256), y.shape
    assert bool(jnp.all(jnp.isfinite(y)))

    # Single-block module forward (the Dual_ResNet spec itself).
    y1 = jax.block_until_ready(dual_resnet_forward(params_a, x))
    assert y1.shape == (B, 256), y1.shape
    assert bool(jnp.all(jnp.isfinite(y1)))

    # Cross-check against the plain-JAX reference (exact Mish, same bf16/f32
    # matmul numerics).
    y_ref = dual_resnet_reference(params_b, dual_resnet_reference(params_a, x))
    max_err = float(jnp.max(jnp.abs(y - y_ref)))
    assert max_err < 5e-2, f"chain mismatch vs reference: {max_err}"

    y1_ref = dual_resnet_reference(params_a, x)
    max_err1 = float(jnp.max(jnp.abs(y1 - y1_ref)))
    assert max_err1 < 5e-2, f"single-block mismatch vs reference: {max_err1}"

    print("KERNEL_OK")
</pallas_src>

<mosaic_0001>
module attributes {stable_mosaic.version = 11 : i64} {
  func.func @kernel(%arg0: memref<8x512xf32, #tpu.memory_space<vmem>>, %arg1: memref<512x384xbf16, #tpu.memory_space<vmem>>, %arg2: memref<2x384xf32, #tpu.memory_space<vmem>>, %arg3: memref<384x256xbf16, #tpu.memory_space<vmem>>, %arg4: memref<3x256xf32, #tpu.memory_space<vmem>>, %arg5: memref<512x256xbf16, #tpu.memory_space<vmem>>, %arg6: memref<256x256xbf16, #tpu.memory_space<vmem>>, %arg7: memref<2x256xf32, #tpu.memory_space<vmem>>, %arg8: memref<256x256xbf16, #tpu.memory_space<vmem>>, %arg9: memref<2x256xf32, #tpu.memory_space<vmem>>, %arg10: memref<8x256xf32, #tpu.memory_space<vmem>>) attributes {dimension_semantics = [], scalar_prefetch = 0 : i64, scratch_operands = 0 : i64, tpu.core_type = #tpu.core_type<tc>} {
    %c0 = arith.constant 0 : index
    %c0_0 = arith.constant 0 : index
    %0 = vector.load %arg0[%c0, %c0_0] : memref<8x512xf32, #tpu.memory_space<vmem>>, vector<8x512xf32>
    %1 = arith.truncf %0 : vector<8x512xf32> to vector<8x512xbf16>
    %c0_1 = arith.constant 0 : index
    %c0_2 = arith.constant 0 : index
    %2 = vector.load %arg1[%c0_1, %c0_2] : memref<512x384xbf16, #tpu.memory_space<vmem>>, vector<512x384xbf16>
    %cst = arith.constant dense<0.000000e+00> : vector<8x384xf32>
    %3 = tpu.matmul %1, %2, %cst {dimension_numbers = #tpu.dot_dimension_numbers<[1], [0], [0], [1], [0, 0, 1, 1], [], []>} : vector<8x512xbf16>, vector<512x384xbf16>, vector<8x384xf32> -> vector<8x384xf32>
    %c0_3 = arith.constant 0 : index
    %c0_4 = arith.constant 0 : index
    %4 = vector.load %arg2[%c0_3, %c0_4] : memref<2x384xf32, #tpu.memory_space<vmem>>, vector<1x384xf32>
    %c1 = arith.constant 1 : index
    %c0_5 = arith.constant 0 : index
    %5 = vector.load %arg2[%c1, %c0_5] : memref<2x384xf32, #tpu.memory_space<vmem>>, vector<1x384xf32>
    %cst_6 = arith.constant dense<0.000000e+00> : vector<384xf32>
    %6 = vector.multi_reduction <add>, %3, %cst_6 [0] : vector<8x384xf32> to vector<384xf32>
    %7 = vector.shape_cast %6 : vector<384xf32> to vector<1x384xf32>
    %cst_7 = arith.constant 8.000000e+00 : f32
    %8 = vector.broadcast %cst_7 : f32 to vector<1x384xf32>
    %9 = arith.divf %7, %8 : vector<1x384xf32>
    %10 = arith.mulf %3, %3 : vector<8x384xf32>
    %cst_8 = arith.constant dense<0.000000e+00> : vector<384xf32>
    %11 = vector.multi_reduction <add>, %10, %cst_8 [0] : vector<8x384xf32> to vector<384xf32>
    %12 = vector.shape_cast %11 : vector<384xf32> to vector<1x384xf32>
    %cst_9 = arith.constant 8.000000e+00 : f32
    %13 = vector.broadcast %cst_9 : f32 to vector<1x384xf32>
    %14 = arith.divf %12, %13 : vector<1x384xf32>
    %15 = arith.mulf %9, %9 : vector<1x384xf32>
    %16 = arith.subf %14, %15 : vector<1x384xf32>
    %cst_10 = arith.constant 0.000000e+00 : f32
    %17 = vector.broadcast %cst_10 : f32 to vector<1x384xf32>
    %18 = arith.maximumf %16, %17 : vector<1x384xf32>
    %19 = vector.broadcast %9 : vector<1x384xf32> to vector<8x384xf32>
    %20 = arith.subf %3, %19 : vector<8x384xf32>
    %cst_11 = arith.constant 9.99999974E-6 : f32
    %21 = vector.broadcast %cst_11 : f32 to vector<1x384xf32>
    %22 = arith.addf %18, %21 : vector<1x384xf32>
    %23 = math.rsqrt %22 : vector<1x384xf32>
    %24 = vector.broadcast %23 : vector<1x384xf32> to vector<8x384xf32>
    %25 = arith.mulf %20, %24 : vector<8x384xf32>
    %26 = vector.broadcast %4 : vector<1x384xf32> to vector<8x384xf32>
    %27 = arith.mulf %25, %26 : vector<8x384xf32>
    %28 = vector.broadcast %5 : vector<1x384xf32> to vector<8x384xf32>
    %29 = arith.addf %27, %28 : vector<8x384xf32>
    %cst_12 = arith.constant 2.000000e+01 : f32
    %30 = vector.broadcast %cst_12 : f32 to vector<8x384xf32>
    %31 = arith.minimumf %29, %30 : vector<8x384xf32>
    %32 = math.exp %31 : vector<8x384xf32>
    %cst_13 = arith.constant 2.000000e+00 : f32
    %33 = vector.broadcast %cst_13 : f32 to vector<8x384xf32>
    %34 = arith.addf %32, %33 : vector<8x384xf32>
    %35 = arith.mulf %32, %34 : vector<8x384xf32>
    %36 = arith.mulf %29, %35 : vector<8x384xf32>
    %cst_14 = arith.constant 2.000000e+00 : f32
    %37 = vector.broadcast %cst_14 : f32 to vector<8x384xf32>
    %38 = arith.addf %35, %37 : vector<8x384xf32>
    %39 = tpu.reciprocal %38 {approx = true} : vector<8x384xf32> -> vector<8x384xf32>
    %40 = arith.mulf %36, %39 : vector<8x384xf32>
    %41 = arith.truncf %40 : vector<8x384xf32> to vector<8x384xbf16>
    %c0_15 = arith.constant 0 : index
    %c0_16 = arith.constant 0 : index
    %42 = vector.load %arg3[%c0_15, %c0_16] : memref<384x256xbf16, #tpu.memory_space<vmem>>, vector<384x256xbf16>
    %cst_17 = arith.constant dense<0.000000e+00> : vector<8x256xf32>
    %43 = tpu.matmul %41, %42, %cst_17 {dimension_numbers = #tpu.dot_dimension_numbers<[1], [0], [0], [1], [0, 0, 1, 1], [], []>} : vector<8x384xbf16>, vector<384x256xbf16>, vector<8x256xf32> -> vector<8x256xf32>
    %c0_18 = arith.constant 0 : index
    %c0_19 = arith.constant 0 : index
    %44 = vector.load %arg4[%c0_18, %c0_19] : memref<3x256xf32, #tpu.memory_space<vmem>>, vector<1x256xf32>
    %c1_20 = arith.constant 1 : index
    %c0_21 = arith.constant 0 : index
    %45 = vector.load %arg4[%c1_20, %c0_21] : memref<3x256xf32, #tpu.memory_space<vmem>>, vector<1x256xf32>
    %cst_22 = arith.constant dense<0.000000e+00> : vector<256xf32>
    %46 = vector.multi_reduction <add>, %43, %cst_22 [0] : vector<8x256xf32> to vector<256xf32>
    %47 = vector.shape_cast %46 : vector<256xf32> to vector<1x256xf32>
    %cst_23 = arith.constant 8.000000e+00 : f32
    %48 = vector.broadcast %cst_23 : f32 to vector<1x256xf32>
    %49 = arith.divf %47, %48 : vector<1x256xf32>
    %50 = arith.mulf %43, %43 : vector<8x256xf32>
    %cst_24 = arith.constant dense<0.000000e+00> : vector<256xf32>
    %51 = vector.multi_reduction <add>, %50, %cst_24 [0] : vector<8x256xf32> to vector<256xf32>
    %52 = vector.shape_cast %51 : vector<256xf32> to vector<1x256xf32>
    %cst_25 = arith.constant 8.000000e+00 : f32
    %53 = vector.broadcast %cst_25 : f32 to vector<1x256xf32>
    %54 = arith.divf %52, %53 : vector<1x256xf32>
    %55 = arith.mulf %49, %49 : vector<1x256xf32>
    %56 = arith.subf %54, %55 : vector<1x256xf32>
    %cst_26 = arith.constant 0.000000e+00 : f32
    %57 = vector.broadcast %cst_26 : f32 to vector<1x256xf32>
    %58 = arith.maximumf %56, %57 : vector<1x256xf32>
    %59 = vector.broadcast %49 : vector<1x256xf32> to vector<8x256xf32>
    %60 = arith.subf %43, %59 : vector<8x256xf32>
    %cst_27 = arith.constant 9.99999974E-6 : f32
    %61 = vector.broadcast %cst_27 : f32 to vector<1x256xf32>
    %62 = arith.addf %58, %61 : vector<1x256xf32>
    %63 = math.rsqrt %62 : vector<1x256xf32>
    %64 = vector.broadcast %63 : vector<1x256xf32> to vector<8x256xf32>
    %65 = arith.mulf %60, %64 : vector<8x256xf32>
    %66 = vector.broadcast %44 : vector<1x256xf32> to vector<8x256xf32>
    %67 = arith.mulf %65, %66 : vector<8x256xf32>
    %68 = vector.broadcast %45 : vector<1x256xf32> to vector<8x256xf32>
    %69 = arith.addf %67, %68 : vector<8x256xf32>
    %c0_28 = arith.constant 0 : index
    %c0_29 = arith.constant 0 : index
    %70 = vector.load %arg5[%c0_28, %c0_29] : memref<512x256xbf16, #tpu.memory_space<vmem>>, vector<512x256xbf16>
    %cst_30 = arith.constant dense<0.000000e+00> : vector<8x256xf32>
    %71 = tpu.matmul %1, %70, %cst_30 {dimension_numbers = #tpu.dot_dimension_numbers<[1], [0], [0], [1], [0, 0, 1, 1], [], []>} : vector<8x512xbf16>, vector<512x256xbf16>, vector<8x256xf32> -> vector<8x256xf32>
    %c2 = arith.constant 2 : index
    %c0_31 = arith.constant 0 : index
    %72 = vector.load %arg4[%c2, %c0_31] : memref<3x256xf32, #tpu.memory_space<vmem>>, vector<1x256xf32>
    %73 = vector.broadcast %72 : vector<1x256xf32> to vector<8x256xf32>
    %74 = arith.addf %71, %73 : vector<8x256xf32>
    %75 = arith.addf %69, %74 : vector<8x256xf32>
    %cst_32 = arith.constant 2.000000e+01 : f32
    %76 = vector.broadcast %cst_32 : f32 to vector<8x256xf32>
    %77 = arith.minimumf %75, %76 : vector<8x256xf32>
    %78 = math.exp %77 : vector<8x256xf32>
    %cst_33 = arith.constant 2.000000e+00 : f32
    %79 = vector.broadcast %cst_33 : f32 to vector<8x256xf32>
    %80 = arith.addf %78, %79 : vector<8x256xf32>
    %81 = arith.mulf %78, %80 : vector<8x256xf32>
    %82 = arith.mulf %75, %81 : vector<8x256xf32>
    %cst_34 = arith.constant 2.000000e+00 : f32
    %83 = vector.broadcast %cst_34 : f32 to vector<8x256xf32>
    %84 = arith.addf %81, %83 : vector<8x256xf32>
    %85 = tpu.reciprocal %84 {approx = true} : vector<8x256xf32> -> vector<8x256xf32>
    %86 = arith.mulf %82, %85 : vector<8x256xf32>
    %87 = arith.truncf %86 : vector<8x256xf32> to vector<8x256xbf16>
    %c0_35 = arith.constant 0 : index
    %c0_36 = arith.constant 0 : index
    %88 = vector.load %arg6[%c0_35, %c0_36] : memref<256x256xbf16, #tpu.memory_space<vmem>>, vector<256x256xbf16>
    %cst_37 = arith.constant dense<0.000000e+00> : vector<8x256xf32>
    %89 = tpu.matmul %87, %88, %cst_37 {dimension_numbers = #tpu.dot_dimension_numbers<[1], [0], [0], [1], [0, 0, 1, 1], [], []>} : vector<8x256xbf16>, vector<256x256xbf16>, vector<8x256xf32> -> vector<8x256xf32>
    %c0_38 = arith.constant 0 : index
    %c0_39 = arith.constant 0 : index
    %90 = vector.load %arg7[%c0_38, %c0_39] : memref<2x256xf32, #tpu.memory_space<vmem>>, vector<1x256xf32>
    %c1_40 = arith.constant 1 : index
    %c0_41 = arith.constant 0 : index
    %91 = vector.load %arg7[%c1_40, %c0_41] : memref<2x256xf32, #tpu.memory_space<vmem>>, vector<1x256xf32>
    %cst_42 = arith.constant dense<0.000000e+00> : vector<256xf32>
    %92 = vector.multi_reduction <add>, %89, %cst_42 [0] : vector<8x256xf32> to vector<256xf32>
    %93 = vector.shape_cast %92 : vector<256xf32> to vector<1x256xf32>
    %cst_43 = arith.constant 8.000000e+00 : f32
    %94 = vector.broadcast %cst_43 : f32 to vector<1x256xf32>
    %95 = arith.divf %93, %94 : vector<1x256xf32>
    %96 = arith.mulf %89, %89 : vector<8x256xf32>
    %cst_44 = arith.constant dense<0.000000e+00> : vector<256xf32>
    %97 = vector.multi_reduction <add>, %96, %cst_44 [0] : vector<8x256xf32> to vector<256xf32>
    %98 = vector.shape_cast %97 : vector<256xf32> to vector<1x256xf32>
    %cst_45 = arith.constant 8.000000e+00 : f32
    %99 = vector.broadcast %cst_45 : f32 to vector<1x256xf32>
    %100 = arith.divf %98, %99 : vector<1x256xf32>
    %101 = arith.mulf %95, %95 : vector<1x256xf32>
    %102 = arith.subf %100, %101 : vector<1x256xf32>
    %cst_46 = arith.constant 0.000000e+00 : f32
    %103 = vector.broadcast %cst_46 : f32 to vector<1x256xf32>
    %104 = arith.maximumf %102, %103 : vector<1x256xf32>
    %105 = vector.broadcast %95 : vector<1x256xf32> to vector<8x256xf32>
    %106 = arith.subf %89, %105 : vector<8x256xf32>
    %cst_47 = arith.constant 9.99999974E-6 : f32
    %107 = vector.broadcast %cst_47 : f32 to vector<1x256xf32>
    %108 = arith.addf %104, %107 : vector<1x256xf32>
    %109 = math.rsqrt %108 : vector<1x256xf32>
    %110 = vector.broadcast %109 : vector<1x256xf32> to vector<8x256xf32>
    %111 = arith.mulf %106, %110 : vector<8x256xf32>
    %112 = vector.broadcast %90 : vector<1x256xf32> to vector<8x256xf32>
    %113 = arith.mulf %111, %112 : vector<8x256xf32>
    %114 = vector.broadcast %91 : vector<1x256xf32> to vector<8x256xf32>
    %115 = arith.addf %113, %114 : vector<8x256xf32>
    %cst_48 = arith.constant 2.000000e+01 : f32
    %116 = vector.broadcast %cst_48 : f32 to vector<8x256xf32>
    %117 = arith.minimumf %115, %116 : vector<8x256xf32>
    %118 = math.exp %117 : vector<8x256xf32>
    %cst_49 = arith.constant 2.000000e+00 : f32
    %119 = vector.broadcast %cst_49 : f32 to vector<8x256xf32>
    %120 = arith.addf %118, %119 : vector<8x256xf32>
    %121 = arith.mulf %118, %120 : vector<8x256xf32>
    %122 = arith.mulf %115, %121 : vector<8x256xf32>
    %cst_50 = arith.constant 2.000000e+00 : f32
    %123 = vector.broadcast %cst_50 : f32 to vector<8x256xf32>
    %124 = arith.addf %121, %123 : vector<8x256xf32>
    %125 = tpu.reciprocal %124 {approx = true} : vector<8x256xf32> -> vector<8x256xf32>
    %126 = arith.mulf %122, %125 : vector<8x256xf32>
    %127 = arith.truncf %126 : vector<8x256xf32> to vector<8x256xbf16>
    %c0_51 = arith.constant 0 : index
    %c0_52 = arith.constant 0 : index
    %128 = vector.load %arg8[%c0_51, %c0_52] : memref<256x256xbf16, #tpu.memory_space<vmem>>, vector<256x256xbf16>
    %cst_53 = arith.constant dense<0.000000e+00> : vector<8x256xf32>
    %129 = tpu.matmul %127, %128, %cst_53 {dimension_numbers = #tpu.dot_dimension_numbers<[1], [0], [0], [1], [0, 0, 1, 1], [], []>} : vector<8x256xbf16>, vector<256x256xbf16>, vector<8x256xf32> -> vector<8x256xf32>
    %c0_54 = arith.constant 0 : index
    %c0_55 = arith.constant 0 : index
    %130 = vector.load %arg9[%c0_54, %c0_55] : memref<2x256xf32, #tpu.memory_space<vmem>>, vector<1x256xf32>
    %c1_56 = arith.constant 1 : index
    %c0_57 = arith.constant 0 : index
    %131 = vector.load %arg9[%c1_56, %c0_57] : memref<2x256xf32, #tpu.memory_space<vmem>>, vector<1x256xf32>
    %cst_58 = arith.constant dense<0.000000e+00> : vector<256xf32>
    %132 = vector.multi_reduction <add>, %129, %cst_58 [0] : vector<8x256xf32> to vector<256xf32>
    %133 = vector.shape_cast %132 : vector<256xf32> to vector<1x256xf32>
    %cst_59 = arith.constant 8.000000e+00 : f32
    %134 = vector.broadcast %cst_59 : f32 to vector<1x256xf32>
    %135 = arith.divf %133, %134 : vector<1x256xf32>
    %136 = arith.mulf %129, %129 : vector<8x256xf32>
    %cst_60 = arith.constant dense<0.000000e+00> : vector<256xf32>
    %137 = vector.multi_reduction <add>, %136, %cst_60 [0] : vector<8x256xf32> to vector<256xf32>
    %138 = vector.shape_cast %137 : vector<256xf32> to vector<1x256xf32>
    %cst_61 = arith.constant 8.000000e+00 : f32
    %139 = vector.broadcast %cst_61 : f32 to vector<1x256xf32>
    %140 = arith.divf %138, %139 : vector<1x256xf32>
    %141 = arith.mulf %135, %135 : vector<1x256xf32>
    %142 = arith.subf %140, %141 : vector<1x256xf32>
    %cst_62 = arith.constant 0.000000e+00 : f32
    %143 = vector.broadcast %cst_62 : f32 to vector<1x256xf32>
    %144 = arith.maximumf %142, %143 : vector<1x256xf32>
    %145 = vector.broadcast %135 : vector<1x256xf32> to vector<8x256xf32>
    %146 = arith.subf %129, %145 : vector<8x256xf32>
    %cst_63 = arith.constant 9.99999974E-6 : f32
    %147 = vector.broadcast %cst_63 : f32 to vector<1x256xf32>
    %148 = arith.addf %144, %147 : vector<1x256xf32>
    %149 = math.rsqrt %148 : vector<1x256xf32>
    %150 = vector.broadcast %149 : vector<1x256xf32> to vector<8x256xf32>
    %151 = arith.mulf %146, %150 : vector<8x256xf32>
    %152 = vector.broadcast %130 : vector<1x256xf32> to vector<8x256xf32>
    %153 = arith.mulf %151, %152 : vector<8x256xf32>
    %154 = vector.broadcast %131 : vector<1x256xf32> to vector<8x256xf32>
    %155 = arith.addf %153, %154 : vector<8x256xf32>
    %156 = arith.addf %155, %86 : vector<8x256xf32>
    %cst_64 = arith.constant 2.000000e+01 : f32
    %157 = vector.broadcast %cst_64 : f32 to vector<8x256xf32>
    %158 = arith.minimumf %156, %157 : vector<8x256xf32>
    %159 = math.exp %158 : vector<8x256xf32>
    %cst_65 = arith.constant 2.000000e+00 : f32
    %160 = vector.broadcast %cst_65 : f32 to vector<8x256xf32>
    %161 = arith.addf %159, %160 : vector<8x256xf32>
    %162 = arith.mulf %159, %161 : vector<8x256xf32>
    %163 = arith.mulf %156, %162 : vector<8x256xf32>
    %cst_66 = arith.constant 2.000000e+00 : f32
    %164 = vector.broadcast %cst_66 : f32 to vector<8x256xf32>
    %165 = arith.addf %162, %164 : vector<8x256xf32>
    %166 = tpu.reciprocal %165 {approx = true} : vector<8x256xf32> -> vector<8x256xf32>
    %167 = arith.mulf %163, %166 : vector<8x256xf32>
    %c0_67 = arith.constant 0 : index
    %c0_68 = arith.constant 0 : index
    %168 = vector.load %arg10[%c0_67, %c0_68] : memref<8x256xf32, #tpu.memory_space<vmem>>, vector<8x256xf32>
    tpu.vector_store %arg10[%c0_67, %c0_68], %167 {strides = array<i32>} : memref<8x256xf32, #tpu.memory_space<vmem>>, vector<8x256xf32>,
    return
  }
}

</mosaic_0001>

<bundles_post_ra>
// kernel: _lambda_.1
= control target key start
LH: loop header
LB: loop body
LE: loop exit
PB: predicated region body
PF: predicated region fallthrough
CT: control target
= control target key end

     0   :  { %s4406_s0 = inlined_call_operand.vmem [shape: f32[8,512], index: 0, kind: input, shape index: {}]   ;;  %s4407_s1 = inlined_call_operand.vmem [shape: bf16[512,384], index: 1, kind: input, shape index: {}]   ;;  %s4408_s2 = inlined_call_operand.vmem [shape: f32[2,384], index: 2, kind: input, shape index: {}]   ;;  %s4409_s3 = inlined_call_operand.vmem [shape: bf16[384,256], index: 3, kind: input, shape index: {}]   ;;  %s4410_s4 = inlined_call_operand.vmem [shape: f32[3,256], index: 4, kind: input, shape index: {}]   ;;  %s4411_s5 = inlined_call_operand.vmem [shape: bf16[512,256], index: 5, kind: input, shape index: {}]   ;;  %s4412_s6 = inlined_call_operand.vmem [shape: bf16[256,256], index: 6, kind: input, shape index: {}]   ;;  %s4413_s7 = inlined_call_operand.vmem [shape: f32[2,256], index: 7, kind: input, shape index: {}, may-alias: {7,9}]   ;;  %s4414_s8 = inlined_call_operand.vmem [shape: bf16[256,256], index: 8, kind: input, shape index: {}]   ;;  %s4415_s9 = inlined_call_operand.vmem [shape: f32[2,256], index: 9, kind: input, shape index: {}, may-alias: {7,9}]   ;;  %s4416_s10 = inlined_call_operand.hbm [shape: f32[8,256], index: 10, kind: output, shape index: {}]  }
   0x1   :  { %v2928_v0 = vld [vmem:[%s4407_s1 + $0x4] ss:$12 sps:$4 sm:$0xff]   ;;  %v2930_v1 = vld [vmem:[%s4407_s1 + $0xc8] ss:$12 sps:$4 sm:$0xff]   ;;  %v2931_v2 = vld [vmem:[%s4407_s1] ss:$12 sps:$4 sm:$0xff]  }
   0x2   :  { %685 = vmatprep.subr.bf16.mxu0 %v2928_v0  ;;  %2874 = vmatprep.subr.bf16.mxu1 %v2930_v1  ;;  %v2932_v3 = vld [vmem:[%s4407_s1 + $0x8] ss:$12 sps:$4 sm:$0xff]   ;;  %v2935_v5 = vld [vmem:[%s4407_s1 + $0xe0] ss:$12 sps:$4 sm:$0xff]   ;;  %v2936_v6 = vld [vmem:[%s4407_s1 + $0x18] ss:$12 sps:$4 sm:$0xff]  }
   0x3   :  { %686 = vmatpush1.bf16.msra.mxu0 %v2931_v2  ;;  %v2933_v4 = vld [vmem:[%s4407_s1 + $0x1c] ss:$12 sps:$4 sm:$0xff]   ;;  %2875 = vmatpush3.bf16.msra.mxu1 %v2932_v3  ;;  %v2937_v7 = vld [vmem:[%s4407_s1 + $0x20] ss:$12 sps:$4 sm:$0xff]   ;;  %v2940_v9 = vld [vmem:[%s4407_s1 + $0xf8] ss:$12 sps:$4 sm:$0xff]  }
   0x4   :  { %687 = vmatprep.subr.bf16.mxu0 %v2933_v4  ;;  %2876 = vmatprep.subr.bf16.mxu1 %v2935_v5  ;;  %v2938_v8 = vld [vmem:[%s4407_s1 + $0x34] ss:$12 sps:$4 sm:$0xff]   ;;  %v2941_v10 = vld [vmem:[%s4407_s1 + $0x30] ss:$12 sps:$4 sm:$0xff]   ;;  %v2942_v11 = vld [vmem:[%s4407_s1 + $0x38] ss:$12 sps:$4 sm:$0xff]  }
   0x5   :  { %v2943_v12 = vld [vmem:[%s4407_s1 + $0x4c] ss:$12 sps:$4 sm:$0xff]   ;;  %v2945_v13 = vld [vmem:[%s4407_s1 + $0x110] ss:$12 sps:$4 sm:$0xff]   ;;  %v2946_v14 = vld [vmem:[%s4407_s1 + $0x48] ss:$12 sps:$4 sm:$0xff]  }
   0x6   :  { %v2947_v15 = vld [vmem:[%s4407_s1 + $0x50] ss:$12 sps:$4 sm:$0xff]   ;;  %v2950_v17 = vld [vmem:[%s4407_s1 + $0x128] ss:$12 sps:$4 sm:$0xff]   ;;  %v2951_v18 = vld [vmem:[%s4407_s1 + $0x60] ss:$12 sps:$4 sm:$0xff]  }
   0x7   :  { %688 = vmatpush1.bf16.msra.mxu0 %v2936_v6  ;;  %2877 = vmatpush3.bf16.msra.mxu1 %v2937_v7  ;;  %v2948_v16 = vld [vmem:[%s4407_s1 + $0x64] ss:$12 sps:$4 sm:$0xff]   ;;  %v2952_v19 = vld [vmem:[%s4407_s1 + $0x68] ss:$12 sps:$4 sm:$0xff]   ;;  %v2955_v21 = vld [vmem:[%s4407_s1 + $0x140] ss:$12 sps:$4 sm:$0xff]  }
   0x8   :  { %689 = vmatprep.subr.bf16.mxu0 %v2938_v8  ;;  %2878 = vmatprep.subr.bf16.mxu1 %v2940_v9  ;;  %v2953_v20 = vld [vmem:[%s4407_s1 + $0x7c] ss:$12 sps:$4 sm:$0xff]   ;;  %v2956_v22 = vld [vmem:[%s4407_s1 + $0x78] ss:$12 sps:$4 sm:$0xff]   ;;  %v2957_v23 = vld [vmem:[%s4407_s1 + $0x80] ss:$12 sps:$4 sm:$0xff]  }
   0x9   :  { %v2958_v24 = vld [vmem:[%s4407_s1 + $0x94] ss:$12 sps:$4 sm:$0xff]   ;;  %v2960_v25 = vld [vmem:[%s4407_s1 + $0x158] ss:$12 sps:$4 sm:$0xff]   ;;  %v2961_v26 = vld [vmem:[%s4407_s1 + $0x90] ss:$12 sps:$4 sm:$0xff]  }
   0xa   :  { %v2962_v27 = vld [vmem:[%s4407_s1 + $0x98] ss:$12 sps:$4 sm:$0xff]   ;;  %v2965_v29 = vld [vmem:[%s4407_s1 + $0x170] ss:$12 sps:$4 sm:$0xff]   ;;  %v2966_v30 = vld [vmem:[%s4407_s1 + $0xa8] ss:$12 sps:$4 sm:$0xff]  }
   0xb   :  { %690 = vmatpush1.bf16.msra.mxu0 %v2941_v10  ;;  %2879 = vmatpush3.bf16.msra.mxu1 %v2942_v11  ;;  %v2963_v28 = vld [vmem:[%s4407_s1 + $0xac] ss:$12 sps:$4 sm:$0xff]   ;;  %v2967_v32 = vld [vmem:[%s4407_s1 + $0xb0] ss:$12 sps:$4 sm:$0xff]   ;;  %v37_v35 = vld [vmem:[%s4406_s0] sm:$0xff] }
   0xc   :  { %691 = vmatprep.subr.bf16.mxu0 %v2943_v12  ;;  %2880 = vmatprep.subr.bf16.mxu1 %v2945_v13  ;;  %v38_v31 = vld [vmem:[%s4406_s0 + $0x8] sm:$0xff]  ;;  %v2968_v34 = vld [vmem:[%s4407_s1 + $0xc4] ss:$12 sps:$4 sm:$0xff]   ;;  %v3570_v38 = vpack.c.bf16 %v37_v35, %v37_v35  ;;  %v2978_v44 = vld [vmem:[%s4407_s1 + $0xf4] ss:$12 sps:$4 sm:$0xff]  }
   0xd   :  { %v3554_v33 = vpack.c.bf16 %v38_v31, %v38_v31  ;;  %v2970_v36 = vld [vmem:[%s4407_s1 + $0x248] ss:$12 sps:$4 sm:$0xff]   ;;  %v2971_v37 = vld [vmem:[%s4407_s1 + $0xc0] ss:$12 sps:$4 sm:$0xff]   ;;  %v2976_v42 = vld [vmem:[%s4407_s1 + $0xd8] ss:$12 sps:$4 sm:$0xff]  }
   0xe   :  { %v2972_v39 = vld [vmem:[%s4407_s1 + $0x188] ss:$12 sps:$4 sm:$0xff]   ;;  %v2975_v41 = vld [vmem:[%s4407_s1 + $0x260] ss:$12 sps:$4 sm:$0xff]   ;;  %v2980_v45 = vld [vmem:[%s4407_s1 + $0x278] ss:$12 sps:$4 sm:$0xff]  }
   0xf   :  { %692 = vmatpush1.bf16.msra.mxu0 %v2946_v14  ;;  %2881 = vmatpush3.bf16.msra.mxu1 %v2947_v15  ;;  %v2973_v40 = vld [vmem:[%s4407_s1 + $0xdc] ss:$12 sps:$4 sm:$0xff]   ;;  %v2977_v43 = vld [vmem:[%s4407_s1 + $0x1a0] ss:$12 sps:$4 sm:$0xff]   ;;  %v2982_v47 = vld [vmem:[%s4407_s1 + $0x1b8] ss:$12 sps:$4 sm:$0xff]  }
  0x10   :  { %693 = vmatprep.subr.bf16.mxu0 %v2948_v16  ;;  %2882 = vmatprep.subr.bf16.mxu1 %v2950_v17  ;;  %v2981_v46 = vld [vmem:[%s4407_s1 + $0xf0] ss:$12 sps:$4 sm:$0xff]   ;;  %v2983_v48 = vld [vmem:[%s4407_s1 + $0x10c] ss:$12 sps:$4 sm:$0xff]   ;;  %v2986_v50 = vld [vmem:[%s4407_s1 + $0x108] ss:$12 sps:$4 sm:$0xff]  }
  0x11   :  { %799 = vmatprep.mubr.bf16.mxu1 %v3554_v33  ;;  %717 = vmatprep.mubr.bf16.mxu0 %v3554_v33  ;;  %v2985_v49 = vld [vmem:[%s4407_s1 + $0x290] ss:$12 sps:$4 sm:$0xff]   ;;  %v2990_v53 = vld [vmem:[%s4407_s1 + $0x2a8] ss:$12 sps:$4 sm:$0xff]   ;;  %v2991_v54 = vld [vmem:[%s4407_s1 + $0x120] ss:$12 sps:$4 sm:$0xff]  }
  0x12   :  { %v2987_v51 = vld [vmem:[%s4407_s1 + $0x1d0] ss:$12 sps:$4 sm:$0xff]   ;;  %v2992_v55 = vld [vmem:[%s4407_s1 + $0x1e8] ss:$12 sps:$4 sm:$0xff]   ;;  %v2995_v57 = vld [vmem:[%s4407_s1 + $0x2c0] ss:$12 sps:$4 sm:$0xff]  }
  0x13   :  { %694 = vmatpush1.bf16.msra.mxu0 %v2951_v18  ;;  %2883 = vmatpush3.bf16.msra.mxu1 %v2952_v19  ;;  %v2988_v52 = vld [vmem:[%s4407_s1 + $0x124] ss:$12 sps:$4 sm:$0xff]   ;;  %v2993_v56 = vld [vmem:[%s4407_s1 + $0x13c] ss:$12 sps:$4 sm:$0xff]   ;;  %v2997_v59 = vld [vmem:[%s4407_s1 + $0x200] ss:$12 sps:$4 sm:$0xff]  }
  0x14   :  { %695 = vmatprep.subr.bf16.mxu0 %v2953_v20  ;;  %2884 = vmatprep.subr.bf16.mxu1 %v2955_v21  ;;  %v2996_v58 = vld [vmem:[%s4407_s1 + $0x138] ss:$12 sps:$4 sm:$0xff]   ;;  %v2998_v60 = vld [vmem:[%s4407_s1 + $0x154] ss:$12 sps:$4 sm:$0xff]   ;;  %v3001_v63 = vld [vmem:[%s4407_s1 + $0x150] ss:$12 sps:$4 sm:$0xff]  }
  0x15   :  { %v3000_v61 = vld [vmem:[%s4407_s1 + $0x2d8] ss:$12 sps:$4 sm:$0xff]   ;;  %v3005_v3 = vld [vmem:[%s4407_s1 + $0x2f0] ss:$12 sps:$4 sm:$0xff]   ;;  %v3006_v4 = vld [vmem:[%s4407_s1 + $0x168] ss:$12 sps:$4 sm:$0xff]  }
  0x16   :  { %v40_v62 = vld [vmem:[%s4406_s0 + $0x18] sm:$0xff]  ;;  %v3010_v6 = vld [vmem:[%s4407_s1 + $0x184] ss:$12 sps:$4 sm:$0xff]   ;;  %v3008_v8 = vld [vmem:[%s4407_s1 + $0x180] ss:$12 sps:$4 sm:$0xff]  }
  0x17   :  { %696 = vmatpush1.bf16.msra.mxu0 %v2956_v22  ;;  %2885 = vmatpush3.bf16.msra.mxu1 %v2957_v23  ;;  %v3648_v0 = vpack.c.bf16 %v40_v62, %v40_v62  ;;  %v3002_v1 = vld [vmem:[%s4407_s1 + $0x218] ss:$12 sps:$4 sm:$0xff]   ;;  %v3007_v5 = vld [vmem:[%s4407_s1 + $0x230] ss:$12 sps:$4 sm:$0xff]   ;;  %v3016_v12 = vld [vmem:[%s4407_s1 + $0x1b4] ss:$12 sps:$4 sm:$0xff]  }
  0x18   :  { %697 = vmatprep.subr.bf16.mxu0 %v2958_v24  ;;  %2886 = vmatprep.subr.bf16.mxu1 %v2960_v25  ;;  %v3003_v2 = vld [vmem:[%s4407_s1 + $0x16c] ss:$12 sps:$4 sm:$0xff]   ;;  %v39_v7 = vld [vmem:[%s4406_s0 + $0x10] sm:$0xff]  ;;  %v3013_v10 = vld [vmem:[%s4407_s1 + $0x19c] ss:$12 sps:$4 sm:$0xff]  }
  0x19   :  { %v3675_v9 = vpack.c.bf16 %v39_v7, %v39_v7  ;;  %v3011_v11 = vld [vmem:[%s4407_s1 + $0x198] ss:$12 sps:$4 sm:$0xff]   ;;  %v3014_v13 = vld [vmem:[%s4407_s1 + $0x1b0] ss:$12 sps:$4 sm:$0xff]   ;;  %v3017_v15 = vld [vmem:[%s4407_s1 + $0x1c8] ss:$12 sps:$4 sm:$0xff]  }
  0x1a   :  { %v3019_v14 = vld [vmem:[%s4407_s1 + $0x1cc] ss:$12 sps:$4 sm:$0xff]   ;;  %v3022_v16 = vld [vmem:[%s4407_s1 + $0x1e4] ss:$12 sps:$4 sm:$0xff]   ;;  %v3025_v18 = vld [vmem:[%s4407_s1 + $0x1fc] ss:$12 sps:$4 sm:$0xff]  }
  0x1b   :  { %698 = vmatpush1.bf16.msra.mxu0 %v2961_v26  ;;  %2887 = vmatpush3.bf16.msra.mxu1 %v2962_v27  ;;  %v3020_v17 = vld [vmem:[%s4407_s1 + $0x1e0] ss:$12 sps:$4 sm:$0xff]   ;;  %v3023_v19 = vld [vmem:[%s4407_s1 + $0x1f8] ss:$12 sps:$4 sm:$0xff]   ;;  %v3026_v21 = vld [vmem:[%s4407_s1 + $0x210] ss:$12 sps:$4 sm:$0xff]  }
  0x1c   :  { %699 = vmatprep.subr.bf16.mxu0 %v2963_v28  ;;  %2888 = vmatprep.subr.bf16.mxu1 %v2965_v29  ;;  %v3028_v20 = vld [vmem:[%s4407_s1 + $0x214] ss:$12 sps:$4 sm:$0xff]   ;;  %v3031_v22 = vld [vmem:[%s4407_s1 + $0x22c] ss:$12 sps:$4 sm:$0xff]   ;;  %v3034_v24 = vld [vmem:[%s4407_s1 + $0x244] ss:$12 sps:$4 sm:$0xff]  }
  0x1d   :  { %v3029_v23 = vld [vmem:[%s4407_s1 + $0x228] ss:$12 sps:$4 sm:$0xff]   ;;  %v3032_v25 = vld [vmem:[%s4407_s1 + $0x240] ss:$12 sps:$4 sm:$0xff]   ;;  %v3035_v27 = vld [vmem:[%s4407_s1 + $0x258] ss:$12 sps:$4 sm:$0xff]  }
  0x1e   :  { %v3037_v26 = vld [vmem:[%s4407_s1 + $0x25c] ss:$12 sps:$4 sm:$0xff]   ;;  %v3040_v28 = vld [vmem:[%s4407_s1 + $0x274] ss:$12 sps:$4 sm:$0xff]  }
  0x1f   :  { %700 = vmatpush1.bf16.msra.mxu0 %v2966_v30  ;;  %2889 = vmatpush3.bf16.msra.mxu1 %v2967_v32  ;;  %v3038_v29 = vld [vmem:[%s4407_s1 + $0x270] ss:$12 sps:$4 sm:$0xff]   ;;  %v3043_v30 = vld [vmem:[%s4407_s1 + $0x28c] ss:$12 sps:$4 sm:$0xff]   ;;  %v3041_v31 = vld [vmem:[%s4407_s1 + $0x288] ss:$12 sps:$4 sm:$0xff]  }
  0x20   :  { %701 = vmatprep.subr.bf16.mxu0 %v2968_v34  ;;  %2896 = vmatprep.subr.bf16.mxu1 %v2970_v36  ;;  %v3046_v32 = vld [vmem:[%s4407_s1 + $0x2a4] ss:$12 sps:$4 sm:$0xff]   ;;  %v3044_v34 = vld [vmem:[%s4407_s1 + $0x2a0] ss:$12 sps:$4 sm:$0xff]   ;;  %v3049_v35 = vld [vmem:[%s4407_s1 + $0x2bc] ss:$12 sps:$4 sm:$0xff]  }
  0x21   :  { %v3047_v36 = vld [vmem:[%s4407_s1 + $0x2b8] ss:$12 sps:$4 sm:$0xff]  }
  0x22   :  { %800 = vmatmul.mubr.bf16.vlgmr.msra.gmra.mrb[0].mxu1 %v3570_v38 }
  0x23   :  { %702 = vmatpush1.bf16.msra.mxu0 %v2971_v37  ;;  %2897 = vmatpush3.bf16.msra.mxu1 %v2972_v39  ;;  %v3052_v37 = vld [vmem:[%s4407_s1 + $0x2d4] ss:$12 sps:$4 sm:$0xff]   ;;  %v3050_v39 = vld [vmem:[%s4407_s1 + $0x2d0] ss:$12 sps:$4 sm:$0xff]  }
  0x24   :  { %703 = vmatprep.subr.bf16.mxu0 %v2973_v40  ;;  %2898 = vmatprep.subr.bf16.mxu1 %v2975_v41  ;;  %v3055_v40 = vld [vmem:[%s4407_s1 + $0x2ec] ss:$12 sps:$4 sm:$0xff]   ;;  %v3053_v41 = vld [vmem:[%s4407_s1 + $0x2e8] ss:$12 sps:$4 sm:$0xff]  }
  0x25   :  { %839 = vmatprep.mubr.bf16.mxu1 %v3648_v0 }
  0x27   :  { %704 = vmatpush1.bf16.msra.mxu0 %v2976_v42  ;;  %2899 = vmatpush3.bf16.msra.mxu1 %v2977_v43 }
  0x28   :  { %705 = vmatprep.subr.bf16.mxu0 %v2978_v44  ;;  %2900 = vmatprep.subr.bf16.mxu1 %v2980_v45 }
  0x2b   :  { %706 = vmatpush1.bf16.msra.mxu0 %v2981_v46  ;;  %2901 = vmatpush3.bf16.msra.mxu1 %v2982_v47 }
  0x2c   :  { %707 = vmatprep.subr.bf16.mxu0 %v2983_v48  ;;  %2902 = vmatprep.subr.bf16.mxu1 %v2985_v49 }
  0x2f   :  { %708 = vmatpush1.bf16.msra.mxu0 %v2986_v50  ;;  %2903 = vmatpush3.bf16.msra.mxu1 %v2987_v51 }
  0x30   :  { %709 = vmatprep.subr.bf16.mxu0 %v2988_v52  ;;  %2904 = vmatprep.subr.bf16.mxu1 %v2990_v53 }
  0x33   :  { %710 = vmatpush1.bf16.msra.mxu0 %v2991_v54  ;;  %2905 = vmatpush3.bf16.msra.mxu1 %v2992_v55 }
  0x34   :  { %711 = vmatprep.subr.bf16.mxu0 %v2993_v56  ;;  %2906 = vmatprep.subr.bf16.mxu1 %v2995_v57 }
  0x37   :  { %712 = vmatpush1.bf16.msra.mxu0 %v2996_v58  ;;  %2907 = vmatpush3.bf16.msra.mxu1 %v2997_v59 }
  0x38   :  { %713 = vmatprep.subr.bf16.mxu0 %v2998_v60  ;;  %2908 = vmatprep.subr.bf16.mxu1 %v3000_v61 }
  0x3b   :  { %714 = vmatpush1.bf16.msra.mxu0 %v3001_v63  ;;  %2909 = vmatpush3.bf16.msra.mxu1 %v3002_v1 }
  0x3c   :  { %715 = vmatprep.subr.bf16.mxu0 %v3003_v2  ;;  %2910 = vmatprep.subr.bf16.mxu1 %v3005_v3 }
  0x3f   :  { %716 = vmatpush1.bf16.msra.mxu0 %v3006_v4  ;;  %2911 = vmatpush3.bf16.msra.mxu1 %v3007_v5 }
  0x40   :  { %726 = vmatprep.subr.bf16.mxu0 %v3010_v6 }
  0x42   :  { %718 = vmatmul.mubr.bf16.vlgmr.msra.gmra.mrb[0].mxu0 %v3570_v38  ;;  %840 = vmatmul.mubr.bf16.vlgmr.msra.gmra.mrb[4].mxu1 %v3675_v9 }
  0x43   :  { %727 = vmatpush1.bf16.msra.mxu0 %v3008_v8  ;;  %758 = vmatprep.mubr.bf16.mxu0 %v3648_v0 }
  0x44   :  { %728 = vmatprep.subr.bf16.mxu0 %v3013_v10 }
  0x47   :  { %729 = vmatpush1.bf16.msra.mxu0 %v3011_v11 }
  0x48   :  { %730 = vmatprep.subr.bf16.mxu0 %v3016_v12 }
  0x4b   :  { %731 = vmatpush1.bf16.msra.mxu0 %v3014_v13 }
  0x4c   :  { %732 = vmatprep.subr.bf16.mxu0 %v3019_v14 }
  0x4f   :  { %733 = vmatpush1.bf16.msra.mxu0 %v3017_v15 }
  0x50   :  { %734 = vmatprep.subr.bf16.mxu0 %v3022_v16 }
  0x53   :  { %735 = vmatpush1.bf16.msra.mxu0 %v3020_v17 }
  0x54   :  { %736 = vmatprep.subr.bf16.mxu0 %v3025_v18 }
  0x57   :  { %737 = vmatpush1.bf16.msra.mxu0 %v3023_v19 }
  0x58   :  { %738 = vmatprep.subr.bf16.mxu0 %v3028_v20 }
  0x5b   :  { %739 = vmatpush1.bf16.msra.mxu0 %v3026_v21 }
  0x5c   :  { %740 = vmatprep.subr.bf16.mxu0 %v3031_v22 }
  0x5f   :  { %741 = vmatpush1.bf16.msra.mxu0 %v3029_v23 }
  0x60   :  { %742 = vmatprep.subr.bf16.mxu0 %v3034_v24 }
  0x63   :  { %743 = vmatpush1.bf16.msra.mxu0 %v3032_v25 }
  0x64   :  { %744 = vmatprep.subr.bf16.mxu0 %v3037_v26 }
  0x67   :  { %745 = vmatpush1.bf16.msra.mxu0 %v3035_v27 }
  0x68   :  { %746 = vmatprep.subr.bf16.mxu0 %v3040_v28 }
  0x6b   :  { %747 = vmatpush1.bf16.msra.mxu0 %v3038_v29 }
  0x6c   :  { %748 = vmatprep.subr.bf16.mxu0 %v3043_v30 }
  0x6f   :  { %749 = vmatpush1.bf16.msra.mxu0 %v3041_v31 }
  0x70   :  { %750 = vmatprep.subr.bf16.mxu0 %v3046_v32 }
  0x73   :  { %751 = vmatpush1.bf16.msra.mxu0 %v3044_v34 }
  0x74   :  { %752 = vmatprep.subr.bf16.mxu0 %v3049_v35 }
  0x77   :  { %753 = vmatpush1.bf16.msra.mxu0 %v3047_v36 }
  0x78   :  { %754 = vmatprep.subr.bf16.mxu0 %v3052_v37 }
  0x7b   :  { %755 = vmatpush1.bf16.msra.mxu0 %v3050_v39 }
  0x7c   :  { %756 = vmatprep.subr.bf16.mxu0 %v3055_v40 }
  0x7f   :  { %757 = vmatpush1.bf16.msra.mxu0 %v3053_v41 }
  0x82   :  { %759 = vmatmul.mubr.bf16.vlgmr.msra.gmra.mrb[0].mxu0 %v3675_v9 }
  0x83   :  { %1857 = vmatprep.mubr.bf16.mxu0 %v3554_v33 }
  0x84   :  { %15 = vsyncpa [#allocation3], 0  ;;  %v3058_v42 = vld [vmem:[%s4409_s3 + $0x4] ss:$8 sps:$4 sm:$0xff]   ;;  %v3056_v43 = vld [vmem:[%s4409_s3] ss:$8 sps:$4 sm:$0xff]  }
  0x85   :  { %1273 = vmatprep.subr.bf16.mxu1 %v3058_v42  ;;  %v3061_v44 = vld [vmem:[%s4409_s3 + $0x14] ss:$8 sps:$4 sm:$0xff]   ;;  %v3059_v45 = vld [vmem:[%s4409_s3 + $0x10] ss:$8 sps:$4 sm:$0xff]   ;;  %v3064_v33 = vld [vmem:[%s4409_s3 + $0x24] ss:$8 sps:$4 sm:$0xff]  }
  0x86   :  { %1274 = vmatpush1.bf16.msra.mxu1 %v3056_v43  ;;  %v3062_v46 = vld [vmem:[%s4409_s3 + $0x20] ss:$8 sps:$4 sm:$0xff]   ;;  %v3067_v47 = vld [vmem:[%s4409_s3 + $0x34] ss:$8 sps:$4 sm:$0xff]   ;;  %v3065_v48 = vld [vmem:[%s4409_s3 + $0x30] ss:$8 sps:$4 sm:$0xff]  }
  0x87   :  { %1275 = vmatprep.subr.bf16.mxu1 %v3061_v44  ;;  %v3070_v49 = vld [vmem:[%s4409_s3 + $0x44] ss:$8 sps:$4 sm:$0xff]   ;;  %v3068_v50 = vld [vmem:[%s4409_s3 + $0x40] ss:$8 sps:$4 sm:$0xff]   ;;  %v3073_v51 = vld [vmem:[%s4409_s3 + $0x54] ss:$8 sps:$4 sm:$0xff]  }
  0x88   :  { %v3071_v53 = vld [vmem:[%s4409_s3 + $0x50] ss:$8 sps:$4 sm:$0xff]   ;;  %v3076_v58 = vld [vmem:[%s4409_s3 + $0x64] ss:$8 sps:$4 sm:$0xff]   ;;  %v3074_v59 = vld [vmem:[%s4409_s3 + $0x60] ss:$8 sps:$4 sm:$0xff]  }
  0x89   :  { %v3079_v60 = vld [vmem:[%s4409_s3 + $0x74] ss:$8 sps:$4 sm:$0xff]   ;;  %v3077_v61 = vld [vmem:[%s4409_s3 + $0x70] ss:$8 sps:$4 sm:$0xff]   ;;  %v3080_v62 = vld [vmem:[%s4409_s3 + $0x80] ss:$8 sps:$4 sm:$0xff]  }
  0x8a   :  { %1276 = vmatpush1.bf16.msra.mxu1 %v3059_v45  ;;  %v3082_v63 = vld [vmem:[%s4409_s3 + $0x84] ss:$8 sps:$4 sm:$0xff]   ;;  %v3085_v1 = vld [vmem:[%s4409_s3 + $0x94] ss:$8 sps:$4 sm:$0xff]   ;;  %v3083_v2 = vld [vmem:[%s4409_s3 + $0x90] ss:$8 sps:$4 sm:$0xff]  }
  0x8b   :  { %1277 = vmatprep.subr.bf16.mxu1 %v3064_v33  ;;  %v3088_v3 = vld [vmem:[%s4409_s3 + $0xa4] ss:$8 sps:$4 sm:$0xff]   ;;  %v3086_v4 = vld [vmem:[%s4409_s3 + $0xa0] ss:$8 sps:$4 sm:$0xff]   ;;  %v3091_v5 = vld [vmem:[%s4409_s3 + $0xb4] ss:$8 sps:$4 sm:$0xff]  }
  0x8c   :  { %v3089_v6 = vld [vmem:[%s4409_s3 + $0xb0] ss:$8 sps:$4 sm:$0xff]   ;;  %v3094_v7 = vld [vmem:[%s4409_s3 + $0xc4] ss:$8 sps:$4 sm:$0xff]   ;;  %v3092_v8 = vld [vmem:[%s4409_s3 + $0xc0] ss:$8 sps:$4 sm:$0xff]  }
  0x8d   :  { %v3097_v10 = vld [vmem:[%s4409_s3 + $0xd4] ss:$8 sps:$4 sm:$0xff]   ;;  %v3095_v11 = vld [vmem:[%s4409_s3 + $0xd0] ss:$8 sps:$4 sm:$0xff]   ;;  %v3100_v12 = vld [vmem:[%s4409_s3 + $0xe4] ss:$8 sps:$4 sm:$0xff]  }
  0x8e   :  { %1278 = vmatpush1.bf16.msra.mxu1 %v3062_v46  ;;  %v3098_v17 = vld [vmem:[%s4409_s3 + $0xe0] ss:$8 sps:$4 sm:$0xff]   ;;  %v3103_v19 = vld [vmem:[%s4409_s3 + $0xf4] ss:$8 sps:$4 sm:$0xff]   ;;  %v3101_v21 = vld [vmem:[%s4409_s3 + $0xf0] ss:$8 sps:$4 sm:$0xff]  }
  0x8f   :  { %1279 = vmatprep.subr.bf16.mxu1 %v3067_v47  ;;  %v3106_v22 = vld [vmem:[%s4409_s3 + $0x104] ss:$8 sps:$4 sm:$0xff]   ;;  %v3125_v23 = vld [vmem:[%s4411_s5] ss:$8 sps:$4 sm:$0xff]   ;;  %v3131_v25 = vld [vmem:[%s4411_s5 + $0x10] ss:$8 sps:$4 sm:$0xff]  }
  0x90   :  { %v3127_v24 = vld [vmem:[%s4411_s5 + $0x4] ss:$8 sps:$4 sm:$0xff]   ;;  %v3133_v26 = vld [vmem:[%s4411_s5 + $0x14] ss:$8 sps:$4 sm:$0xff]   ;;  %v3137_v27 = vld [vmem:[%s4411_s5 + $0x20] ss:$8 sps:$4 sm:$0xff]  }
  0x91   :  { %1825 = vmatprep.subr.bf16.mxu0 %v3127_v24  ;;  %v3139_v28 = vld [vmem:[%s4411_s5 + $0x24] ss:$8 sps:$4 sm:$0xff]   ;;  %v3143_v29 = vld [vmem:[%s4411_s5 + $0x30] ss:$8 sps:$4 sm:$0xff]   ;;  %v3145_v30 = vld [vmem:[%s4411_s5 + $0x34] ss:$8 sps:$4 sm:$0xff]  }
  0x92   :  { %1280 = vmatpush1.bf16.msra.mxu1 %v3065_v48  ;;  %1826 = vmatpush1.bf16.msra.mxu0 %v3125_v23  ;;  %v3149_v34 = vld [vmem:[%s4411_s5 + $0x40] ss:$8 sps:$4 sm:$0xff]   ;;  %v3151_v35 = vld [vmem:[%s4411_s5 + $0x44] ss:$8 sps:$4 sm:$0xff]   ;;  %v3155_v39 = vld [vmem:[%s4411_s5 + $0x50] ss:$8 sps:$4 sm:$0xff]  }
  0x93   :  { %1281 = vmatprep.subr.bf16.mxu1 %v3070_v49  ;;  %1827 = vmatprep.subr.bf16.mxu0 %v3133_v26  ;;  %v3157_v40 = vld [vmem:[%s4411_s5 + $0x54] ss:$8 sps:$4 sm:$0xff]   ;;  %v3161_v43 = vld [vmem:[%s4411_s5 + $0x60] ss:$8 sps:$4 sm:$0xff]   ;;  %v3163_v44 = vld [vmem:[%s4411_s5 + $0x64] ss:$8 sps:$4 sm:$0xff]  }
  0x96   :  { %1282 = vmatpush1.bf16.msra.mxu1 %v3068_v50  ;;  %1828 = vmatpush1.bf16.msra.mxu0 %v3131_v25 }
  0x97   :  { %1283 = vmatprep.subr.bf16.mxu1 %v3073_v51  ;;  %1829 = vmatprep.subr.bf16.mxu0 %v3139_v28 }
  0x9a   :  { %1284 = vmatpush1.bf16.msra.mxu1 %v3071_v53  ;;  %1830 = vmatpush1.bf16.msra.mxu0 %v3137_v27 }
  0x9b   :  { %1285 = vmatprep.subr.bf16.mxu1 %v3076_v58  ;;  %1831 = vmatprep.subr.bf16.mxu0 %v3145_v30 }
  0x9e   :  { %1286 = vmatpush1.bf16.msra.mxu1 %v3074_v59  ;;  %1832 = vmatpush1.bf16.msra.mxu0 %v3143_v29 }
  0x9f   :  { %1287 = vmatprep.subr.bf16.mxu1 %v3079_v60  ;;  %1833 = vmatprep.subr.bf16.mxu0 %v3151_v35 }
  0xa2   :  { %1288 = vmatpush1.bf16.msra.mxu1 %v3077_v61  ;;  %1834 = vmatpush1.bf16.msra.mxu0 %v3149_v34 }
  0xa3   :  { %1289 = vmatprep.subr.bf16.mxu1 %v3082_v63  ;;  %1835 = vmatprep.subr.bf16.mxu0 %v3157_v40 }
  0xa6   :  { %1290 = vmatpush1.bf16.msra.mxu1 %v3080_v62  ;;  %1836 = vmatpush1.bf16.msra.mxu0 %v3155_v39 }
  0xa7   :  { %1291 = vmatprep.subr.bf16.mxu1 %v3085_v1  ;;  %1837 = vmatprep.subr.bf16.mxu0 %v3163_v44 }
  0xaa   :  { %1292 = vmatpush1.bf16.msra.mxu1 %v3083_v2  ;;  %1838 = vmatpush1.bf16.msra.mxu0 %v3161_v43  ;;  %v3193_v43 = vld [vmem:[%s4411_s5 + $0xb4] ss:$8 sps:$4 sm:$0xff]  }
  0xab   :  { %1293 = vmatprep.subr.bf16.mxu1 %v3088_v3 }
  0xae   :  { %1294 = vmatpush1.bf16.msra.mxu1 %v3086_v4 }
  0xaf   :  { %1295 = vmatprep.subr.bf16.mxu1 %v3091_v5  ;;  %v3173_v5 = vld [vmem:[%s4411_s5 + $0x80] ss:$8 sps:$4 sm:$0xff]  }
  0xb2   :  { %1296 = vmatpush1.bf16.msra.mxu1 %v3089_v6  ;;  %v3175_v6 = vld [vmem:[%s4411_s5 + $0x84] ss:$8 sps:$4 sm:$0xff]  }
  0xb3   :  { %1297 = vmatprep.subr.bf16.mxu1 %v3094_v7 }
  0xb6   :  { %1298 = vmatpush1.bf16.msra.mxu1 %v3092_v8 }
  0xb7   :  { %1299 = vmatprep.subr.bf16.mxu1 %v3097_v10 }
  0xba   :  { %1300 = vmatpush1.bf16.msra.mxu1 %v3095_v11 }
  0xbb   :  { %1301 = vmatprep.subr.bf16.mxu1 %v3100_v12 }
  0xbe   :  { %1302 = vmatpush1.bf16.msra.mxu1 %v3098_v17 }
  0xbf   :  { %1303 = vmatprep.subr.bf16.mxu1 %v3103_v19  ;;  %v3181_v19 = vld [vmem:[%s4411_s5 + $0x94] ss:$8 sps:$4 sm:$0xff]  }
  0xc2   :  { %1304 = vmatpush1.bf16.msra.mxu1 %v3101_v21 }
  0xc3   :  { %1314 = vmatprep.subr.bf16.mxu1 %v3106_v22 }
  0xf5   :  { %v2890_v52 = vpop.f32.mrb[0].mxu1 }
  0xf6   :  { %v2891_v54 = vpop.f32.mrb[1].mxu1 }
  0xf7   :  { %v2892_v55 = vadd.f32 %v2891_v54, %v2890_v52  ;;  %v2893_v56 = vpop.f32.mrb[2].mxu1 }
  0xf8   :  { %v2894_v57 = vpop.f32.mrb[3].mxu1  ;;  %v3167_v56 = vld [vmem:[%s4411_s5 + $0x70] ss:$8 sps:$4 sm:$0xff]  }
  0xf9   :  { %v3169_v57 = vld [vmem:[%s4411_s5 + $0x74] ss:$8 sps:$4 sm:$0xff]  }
  0xfa   :  { %1839 = vmatprep.subr.bf16.mxu0 %v3169_v57 }
  0xfb   :  { %1840 = vmatpush1.bf16.msra.mxu0 %v3167_v56 }
  0xfc   :  { %1841 = vmatprep.subr.bf16.mxu0 %v3175_v6 }
  0xff   :  { %1842 = vmatpush1.bf16.msra.mxu0 %v3173_v5 }
 0x100   :  { %1843 = vmatprep.subr.bf16.mxu0 %v3181_v19 }
 0x115   :  { %v2912_v13 = vpop.f32.mrb[4].mxu1 }
 0x116   :  { %v2913_v14 = vpop.f32.mrb[5].mxu1 }
 0x117   :  { %v2914_v15 = vadd.f32 %v2913_v14, %v2912_v13  ;;  %v2915_v16 = vpop.f32.mrb[6].mxu1 }
 0x118   :  { %v2916_v18 = vpop.f32.mrb[7].mxu1 }
 0x119   :  { %v3865_v20 = vadd.f32 %v2914_v15, %v2892_v55  ;;  %v3179_v18 = vld [vmem:[%s4411_s5 + $0x90] ss:$8 sps:$4 sm:$0xff]  }
 0x11a   :  { %1844 = vmatpush1.bf16.msra.mxu0 %v3179_v18 }
 0x11b   :  { %v862_v31 = vrot.slane %v3865_v20, 4  ;;  %v874_v32 = vmul.f32 %v3865_v20, %v3865_v20 }
 0x11d   :  { %v863_v36 = vadd.f32 %v862_v31, %v3865_v20  ;;  %v887_v37 = vrot.slane %v874_v32, 4  ;;  %v3185_v31 = vld [vmem:[%s4411_s5 + $0xa0] ss:$8 sps:$4 sm:$0xff]  }
 0x11f   :  { %v864_v41 = vrot.slane %v863_v36, 2  ;;  %v888_v42 = vadd.f32 %v887_v37, %v874_v32  ;;  %v3187_v32 = vld [vmem:[%s4411_s5 + $0xa4] ss:$8 sps:$4 sm:$0xff]  }
 0x120   :  { %1845 = vmatprep.subr.bf16.mxu0 %v3187_v32 }
 0x121   :  { %v865_v33 = vadd.f32 %v864_v41, %v863_v36  ;;  %v889_v46 = vrot.slane %v888_v42, 2  ;;  %1846 = vmatpush1.bf16.msra.mxu0 %v3185_v31 }
 0x122   :  { %1847 = vmatprep.subr.bf16.mxu0 %v3193_v43 }
 0x123   :  { %v866_v60 = vrot.slane %v865_v33, 1  ;;  %v890_v61 = vadd.f32 %v889_v46, %v888_v42  ;;  %v3191_v42 = vld [vmem:[%s4411_s5 + $0xb0] ss:$8 sps:$4 sm:$0xff]  }
 0x125   :  { %v867_v10 = vadd.f32 %v866_v60, %v865_v33  ;;  %v891_v11 = vrot.slane %v890_v61, 1  ;;  %1848 = vmatpush1.bf16.msra.mxu0 %v3191_v42  ;;  %v3209_v60 = vld [vmem:[%s4411_s5 + $0xe0] ss:$8 sps:$4 sm:$0xff]  }
 0x127   :  { %v3949_v23 = vmul.f32 0.125, %v867_v10  ;;  %v892_v24 = vadd.f32 %v891_v11, %v890_v61  ;;  %v3211_v61 = vld [vmem:[%s4411_s5 + $0xe4] ss:$8 sps:$4 sm:$0xff]   ;;  %v3215_v10 = vld [vmem:[%s4411_s5 + $0xf0] ss:$8 sps:$4 sm:$0xff]  }
 0x128   :  { %v3217_v11 = vld [vmem:[%s4411_s5 + $0xf4] ss:$8 sps:$4 sm:$0xff]  }
 0x129   :  { %v895_v36 = vmul.f32 0.125, %v892_v24  ;;  %v898_v37 = vmul.f32 %v3949_v23, %v3949_v23 }
 0x12b   :  { %v901_v33 = vsub.f32 %v895_v36, %v898_v37 }
 0x155   :  { %v3919_v45 = vpop.f32.mrb[0].mxu0 }
 0x156   :  { %v850_v47 = vrot.slane %v3919_v45, 4  ;;  %v872_v48 = vmul.f32 %v3919_v45, %v3919_v45  ;;  %v3924_v49 = vpop.f32.mrb[1].mxu0 }
 0x157   :  { %v856_v50 = vrot.slane %v3924_v49, 4  ;;  %v873_v51 = vmul.f32 %v3924_v49, %v3924_v49  ;;  %v764_v52 = vpop.f32.mrb[2].mxu0 }
 0x158   :  { %v851_v53 = vadd.f32 %v850_v47, %v3919_v45  ;;  %v875_v54 = vrot.slane %v872_v48, 4  ;;  %v765_v55 = vpop.f32.mrb[3].mxu0  ;;  %v918_v47 = vlaneseq  ;;  %v904_v52 = vmax.f32 %v901_v33, 0.0  ;;  %v3104_v33 = vld [vmem:[%s4409_s3 + $0x100] ss:$8 sps:$4 sm:$0xff]  }
 0x159   :  { %v857_v58 = vadd.f32 %v856_v50, %v3924_v49  ;;  %v881_v59 = vrot.slane %v873_v51, 4  ;;  %v3197_v50 = vld [vmem:[%s4411_s5 + $0xc0] ss:$8 sps:$4 sm:$0xff]   ;;  %v3205_v55 = vld [vmem:[%s4411_s5 + $0xd4] ss:$8 sps:$4 sm:$0xff]  }
 0x15a   :  { %v852_v62 = vrot.slane %v851_v53, 2  ;;  %v876_v63 = vadd.f32 %v875_v54, %v872_v48  ;;  %v3203_v54 = vld [vmem:[%s4411_s5 + $0xd0] ss:$8 sps:$4 sm:$0xff]   ;;  %v910_v57 = vadd.f32 1e-05, %v904_v52 }
 0x15b   :  { %v858_v1 = vrot.slane %v857_v58, 2  ;;  %v882_v2 = vadd.f32 %v881_v59, %v873_v51  ;;  %v3199_v51 = vld [vmem:[%s4411_s5 + $0xc4] ss:$8 sps:$4 sm:$0xff]  }
 0x15c   :  { %v853_v3 = vadd.f32 %v852_v62, %v851_v53  ;;  %v877_v4 = vrot.slane %v876_v63, 2  ;;  %1849 = vmatprep.subr.bf16.mxu0 %v3199_v51  ;;  %v919_v53 = vshrl.u32 %v918_v47, 7  ;;  %v847_v59 = vld [vmem:[%s4408_s2] ss:$2 sm:$0x7]  ;;  %v3398_v51 = vmov 0  }
 0x15d   :  { %v859_v7 = vadd.f32 %v858_v1, %v857_v58  ;;  %v883_v8 = vrot.slane %v882_v2, 2  ;;  %1850 = vmatpush1.bf16.msra.mxu0 %v3197_v50  ;;  %v3107_v50 = vld [vmem:[%s4409_s3 + $0x110] ss:$8 sps:$4 sm:$0xff]  }
 0x15e   :  { %v854_v12 = vrot.slane %v853_v3, 1  ;;  %v878_v13 = vadd.f32 %v877_v4, %v876_v63  ;;  %v3977_v56 = vsub.s32 0, %v919_v53  ;;  %v3979_v58 = vsub.s32 1, %v919_v53  ;;  %1851 = vmatprep.subr.bf16.mxu0 %v3205_v55 }
 0x15f   :  { %v860_v14 = vrot.slane %v859_v7, 1  ;;  %v884_v15 = vadd.f32 %v883_v8, %v882_v2  ;;  %v2693_v2 = vld [vmem:[%s4408_s2 + $0x1] ss:$2 sm:$0x7]  ;;  %v928_v19 = vsub.s32 2, %v919_v53 }
 0x160   :  { %v855_v16 = vadd.f32 %v854_v12, %v853_v3  ;;  %v879_v17 = vrot.slane %v878_v13, 1  ;;  %v921_v63 = vrot.slane %v847_v59, %v3977_v56  ;;  %v925_v4 = vrot.slane %v847_v59, %v3979_v58  ;;  %v3112_v53 = vld [vmem:[%s4409_s3 + $0x124] ss:$8 sps:$4 sm:$0xff]  }
 0x161   :  { %v861_v21 = vadd.f32 %v860_v14, %v859_v7  ;;  %v885_v22 = vrot.slane %v884_v15, 1  ;;  %1852 = vmatpush1.bf16.msra.mxu0 %v3203_v54  ;;  %v940_v7 = vrot.slane %v2693_v2, %v3977_v56  ;;  %v3110_v54 = vld [vmem:[%s4409_s3 + $0x120] ss:$8 sps:$4 sm:$0xff]  }
 0x162   :  { %v869_v25 = vmul.f32 0.125, %v855_v16  ;;  %v880_v26 = vadd.f32 %v879_v17, %v878_v13  ;;  %1853 = vmatprep.subr.bf16.mxu0 %v3211_v61  ;;  %v907_v17 = vsub.f32 %v3865_v20, %v3949_v23  ;;  %v3118_v61 = vld [vmem:[%s4409_s3 + $0x144] ss:$8 sps:$4 sm:$0xff]  }
 0x163   :  { %v870_v27 = vmul.f32 0.125, %v861_v21  ;;  %v886_v28 = vadd.f32 %v885_v22, %v884_v15 }
 0x164   :  { %v893_v29 = vmul.f32 0.125, %v880_v26  ;;  %v896_v30 = vmul.f32 %v869_v25, %v869_v25  ;;  %v905_v62 = vsub.f32 %v3919_v45, %v869_v25  ;;  %v944_v45 = vrot.slane %v2693_v2, %v3979_v58 }
 0x165   :  { %v894_v34 = vmul.f32 0.125, %v886_v28  ;;  %v897_v35 = vmul.f32 %v870_v27, %v870_v27  ;;  %v906_v3 = vsub.f32 %v3924_v49, %v870_v27  ;;  %1854 = vmatpush1.bf16.msra.mxu0 %v3209_v60  ;;  %v929_v25 = vrot.slane %v847_v59, %v928_v19  ;;  %v3113_v59 = vld [vmem:[%s4409_s3 + $0x130] ss:$8 sps:$4 sm:$0xff]  }
 0x166   :  { %v899_v39 = vsub.f32 %v893_v29, %v896_v30  ;;  %1855 = vmatprep.subr.bf16.mxu0 %v3217_v11  ;;  %v948_v27 = vrot.slane %v2693_v2, %v928_v19  ;;  %v3124_v2 = vld [vmem:[%s4409_s3 + $0x164] ss:$8 sps:$4 sm:$0xff]   ;;  %v3164_v19 = vld [vmem:[%s4411_s5 + $0x150] ss:$8 sps:$4 sm:$0xff]  }
 0x167   :  { %v900_v40 = vsub.f32 %v894_v34, %v897_v35 }
 0x168   :  { %v902_v41 = vmax.f32 %v899_v39, 0.0 }
 0x169   :  { %v903_v44 = vmax.f32 %v900_v40, 0.0  ;;  %1856 = vmatpush1.bf16.msra.mxu0 %v3215_v10  ;;  %v3134_v10 = vld [vmem:[%s4411_s5 + $0x100] ss:$8 sps:$4 sm:$0xff]  }
 0x16a   :  { %v908_v46 = vadd.f32 1e-05, %v902_v41 }
 0x16b   :  { %v909_v48 = vadd.f32 1e-05, %v903_v44 }
 0x16c   :  { %3320 = vrsqrt.f32 %v908_v46  ;;  %1858 = vmatmul.mubr.bf16.vlgmr.msra.gmra.mrb[4].mxu0 %v3570_v38 }
 0x16d   :  { %3322 = vrsqrt.f32 %v909_v48  ;;  %v3109_v48 = vld [vmem:[%s4409_s3 + $0x114] ss:$8 sps:$4 sm:$0xff]  }
 0x16e   :  { %3324 = vrsqrt.f32 %v910_v57  ;;  %v3115_v57 = vld [vmem:[%s4409_s3 + $0x134] ss:$8 sps:$4 sm:$0xff]  }
 0x176   :  { %v3321_v1 = vpop.eup %3320 }
 0x177   :  { %v3323_v5 = vpop.eup %3322  ;;  %v914_v6 = vmul.f32 %v3321_v1, %v905_v62  ;;  %v3116_v62 = vld [vmem:[%s4409_s3 + $0x140] ss:$8 sps:$4 sm:$0xff]   ;;  %v3119_v1 = vld [vmem:[%s4409_s3 + $0x150] ss:$8 sps:$4 sm:$0xff]  }
 0x178   :  { %v915_v8 = vmul.f32 %v3323_v5, %v906_v3  ;;  %v3325_v21 = vpop.eup %3324  ;;  %v3122_v3 = vld [vmem:[%s4409_s3 + $0x160] ss:$8 sps:$4 sm:$0xff]  }
 0x179   :  { %v933_v49 = vmul.f32 %v921_v63, %v914_v6  ;;  %v916_v24 = vmul.f32 %v3325_v21, %v907_v17  ;;  %v3121_v63 = vld [vmem:[%s4409_s3 + $0x154] ss:$8 sps:$4 sm:$0xff]   ;;  %v3158_v17 = vld [vmem:[%s4411_s5 + $0x140] ss:$8 sps:$4 sm:$0xff]   ;;  %v3172_v21 = vld [vmem:[%s4411_s5 + $0x164] ss:$8 sps:$4 sm:$0xff]  }
 0x17a   :  { %v934_v12 = vmul.f32 %v925_v4, %v915_v8  ;;  %v3130_v4 = vld [vmem:[%s4409_s3 + $0x174] ss:$8 sps:$4 sm:$0xff]  }
 0x17b   :  { %v952_v13 = vadd.f32 %v940_v7, %v933_v49  ;;  %v935_v26 = vmul.f32 %v929_v25, %v916_v24  ;;  %v3128_v7 = vld [vmem:[%s4409_s3 + $0x170] ss:$8 sps:$4 sm:$0xff]   ;;  %v3142_v49 = vld [vmem:[%s4411_s5 + $0x114] ss:$8 sps:$4 sm:$0xff]  }
 0x17c   :  { %v953_v14 = vadd.f32 %v944_v45, %v934_v12  ;;  %v3136_v45 = vld [vmem:[%s4411_s5 + $0x104] ss:$8 sps:$4 sm:$0xff]   ;;  %v3140_v12 = vld [vmem:[%s4411_s5 + $0x110] ss:$8 sps:$4 sm:$0xff]   ;;  %v3178_v24 = vld [vmem:[%s4411_s5 + $0x174] ss:$8 sps:$4 sm:$0xff]  }
 0x17d   :  { %v955_v15 = vmin.f32 %v952_v13, 20.0  ;;  %v954_v29 = vadd.f32 %v948_v27, %v935_v26  ;;  %v3176_v25 = vld [vmem:[%s4411_s5 + $0x170] ss:$8 sps:$4 sm:$0xff]   ;;  %v3184_v26 = vld [vmem:[%s4411_s5 + $0x184] ss:$8 sps:$4 sm:$0xff]  }
 0x17e   :  { %v956_v16 = vmin.f32 %v953_v14, 20.0  ;;  %v3182_v27 = vld [vmem:[%s4411_s5 + $0x180] ss:$8 sps:$4 sm:$0xff]  }
 0x17f   :  { %v958_v18 = vmul.f32 1.442695, %v955_v15  ;;  %v957_v35 = vmin.f32 %v954_v29, 20.0  ;;  %v3154_v15 = vld [vmem:[%s4411_s5 + $0x134] ss:$8 sps:$4 sm:$0xff]  }
 0x180   :  { %v960_v22 = vmul.f32 1.442695, %v956_v16  ;;  %v3160_v16 = vld [vmem:[%s4411_s5 + $0x144] ss:$8 sps:$4 sm:$0xff]  }
 0x181   :  { %3326 = vpow2.f32 %v958_v18  ;;  %v962_v23 = vmul.f32 1.442695, %v957_v35  ;;  %v3166_v18 = vld [vmem:[%s4411_s5 + $0x154] ss:$8 sps:$4 sm:$0xff]   ;;  %v3206_v35 = vld [vmem:[%s4411_s5 + $0x1c0] ss:$8 sps:$4 sm:$0xff]  }
 0x182   :  { %3328 = vpow2.f32 %v960_v22  ;;  %v3170_v22 = vld [vmem:[%s4411_s5 + $0x160] ss:$8 sps:$4 sm:$0xff]  }
 0x18b   :  { %v3327_v28 = vpop.eup %3326 }
 0x18c   :  { %v3329_v30 = vpop.eup %3328  ;;  %v964_v31 = vadd.f32 2.0, %v3327_v28 }
 0x18d   :  { %v965_v32 = vadd.f32 2.0, %v3329_v30 }
 0x18e   :  { %v967_v34 = vmul.f32 %v3327_v28, %v964_v31  ;;  %v3190_v28 = vld [vmem:[%s4411_s5 + $0x194] ss:$8 sps:$4 sm:$0xff]   ;;  %v3194_v31 = vld [vmem:[%s4411_s5 + $0x1a0] ss:$8 sps:$4 sm:$0xff]  }
 0x18f   :  { %v968_v38 = vmul.f32 %v3329_v30, %v965_v32  ;;  %v3196_v30 = vld [vmem:[%s4411_s5 + $0x1a4] ss:$8 sps:$4 sm:$0xff]   ;;  %v3202_v32 = vld [vmem:[%s4411_s5 + $0x1b4] ss:$8 sps:$4 sm:$0xff]  }
 0x190   :  { %v973_v36 = vadd.f32 2.0, %v967_v34  ;;  %v970_v37 = vmul.f32 %v967_v34, %v952_v13  ;;  %v3148_v13 = vld [vmem:[%s4411_s5 + $0x124] ss:$8 sps:$4 sm:$0xff]   ;;  %v3200_v34 = vld [vmem:[%s4411_s5 + $0x1b0] ss:$8 sps:$4 sm:$0xff]  }
 0x191   :  { %v974_v20 = vadd.f32 2.0, %v968_v38  ;;  %v971_v40 = vmul.f32 %v968_v38, %v953_v14  ;;  %v3146_v14 = vld [vmem:[%s4411_s5 + $0x120] ss:$8 sps:$4 sm:$0xff]   ;;  %v3208_v38 = vld [vmem:[%s4411_s5 + $0x1c4] ss:$8 sps:$4 sm:$0xff]  }
 0x192   :  { %3330 = vrcp.f32 %v973_v36  ;;  %v3214_v36 = vld [vmem:[%s4411_s5 + $0x1d4] ss:$8 sps:$4 sm:$0xff]  }
 0x193   :  { %3332 = vrcp.f32 %v974_v20  ;;  %v3212_v20 = vld [vmem:[%s4411_s5 + $0x1d0] ss:$8 sps:$4 sm:$0xff]  }
 0x194   :  { %3334 = vpow2.f32 %v962_v23  ;;  %v3220_v23 = vld [vmem:[%s4411_s5 + $0x1e4] ss:$8 sps:$4 sm:$0xff]  }
 0x19c   :  { %v3331_v39 = vpop.eup %3330 }
 0x19d   :  { %v3333_v41 = vpop.eup %3332  ;;  %v979_v42 = vmul.f32 %v3331_v39, %v970_v37  ;;  %v3218_v37 = vld [vmem:[%s4411_s5 + $0x1e0] ss:$8 sps:$4 sm:$0xff]   ;;  %v3223_v39 = vld [vmem:[%s4411_s5 + $0x1f4] ss:$8 sps:$4 sm:$0xff]  }
 0x19e   :  { %v980_v43 = vmul.f32 %v3333_v41, %v971_v40  ;;  %v3335_v46 = vpop.eup %3334  ;;  %v3221_v40 = vld [vmem:[%s4411_s5 + $0x1f0] ss:$8 sps:$4 sm:$0xff]   ;;  %v3224_v41 = vld [vmem:[%s4412_s6] ss:$8 sps:$4 sm:$0xff]  }
 0x19f   :  { %v982_v47 = vpack.c.bf16 %v979_v42, %v979_v42  ;;  %v966_v52 = vadd.f32 2.0, %v3335_v46  ;;  %v3226_v42 = vld [vmem:[%s4412_s6 + $0x4] ss:$8 sps:$4 sm:$0xff]  }
 0x1a0   :  { %v983_v44 = vpack.c.bf16 %v980_v43, %v980_v43  ;;  %v3229_v43 = vld [vmem:[%s4412_s6 + $0x14] ss:$8 sps:$4 sm:$0xff]   ;;  %2121 = vmatprep.subr.bf16.mxu0 %v3226_v42 }
 0x1a1   :  { %v969_v55 = vmul.f32 %v3335_v46, %v966_v52  ;;  %2122 = vmatpush1.bf16.msra.mxu0 %v3224_v41  ;;  %v3235_v46 = vld [vmem:[%s4412_s6 + $0x34] ss:$8 sps:$4 sm:$0xff]   ;;  %v3239_v52 = vld [vmem:[%s4412_s6 + $0x50] ss:$8 sps:$4 sm:$0xff]  }
 0x1a2   :  { %1305 = vmatprep.mubr.bf16.mxu1 %v983_v44  ;;  %v3227_v44 = vld [vmem:[%s4412_s6 + $0x10] ss:$8 sps:$4 sm:$0xff]   ;;  %2123 = vmatprep.subr.bf16.mxu0 %v3229_v43 }
 0x1a3   :  { %1306 = vmatmul.mubr.bf16.vlgmr.msra.gmra.mrb[8].mxu1 %v982_v47  ;;  %v975_v60 = vadd.f32 2.0, %v969_v55  ;;  %v972_v5 = vmul.f32 %v969_v55, %v954_v29  ;;  %v3188_v29 = vld [vmem:[%s4411_s5 + $0x190] ss:$8 sps:$4 sm:$0xff]  }
 0x1a4   :  { %1315 = vmatpush1.bf16.msra.mxu1 %v3104_v33  ;;  %1346 = vmatprep.mubr.bf16.mxu1 %v3398_v51  ;;  %v3230_v33 = vld [vmem:[%s4412_s6 + $0x20] ss:$8 sps:$4 sm:$0xff]   ;;  %v3233_v47 = vld [vmem:[%s4412_s6 + $0x30] ss:$8 sps:$4 sm:$0xff]   ;;  %v3241_v51 = vld [vmem:[%s4412_s6 + $0x54] ss:$8 sps:$4 sm:$0xff]  }
 0x1a5   :  { %1316 = vmatprep.subr.bf16.mxu1 %v3109_v48  ;;  %3336 = vrcp.f32 %v975_v60  ;;  %2124 = vmatpush1.bf16.msra.mxu0 %v3227_v44  ;;  %v3238_v48 = vld [vmem:[%s4412_s6 + $0x44] ss:$8 sps:$4 sm:$0xff]   ;;  %v3242_v60 = vld [vmem:[%s4412_s6 + $0x60] ss:$8 sps:$4 sm:$0xff]  }
 0x1a8   :  { %1317 = vmatpush1.bf16.msra.mxu1 %v3107_v50  ;;  %v3236_v50 = vld [vmem:[%s4412_s6 + $0x40] ss:$8 sps:$4 sm:$0xff]  }
 0x1a9   :  { %1318 = vmatprep.subr.bf16.mxu1 %v3112_v53 }
 0x1ac   :  { %1319 = vmatpush1.bf16.msra.mxu1 %v3110_v54 }
 0x1ad   :  { %1320 = vmatprep.subr.bf16.mxu1 %v3115_v57 }
 0x1af   :  { %v3337_v6 = vpop.eup %3336 }
 0x1b0   :  { %1321 = vmatpush1.bf16.msra.mxu1 %v3113_v59  ;;  %v981_v8 = vmul.f32 %v3337_v6, %v972_v5  ;;  %v3244_v59 = vld [vmem:[%s4412_s6 + $0x64] ss:$8 sps:$4 sm:$0xff]   ;;  %v3254_v5 = vld [vmem:[%s4412_s6 + $0xa0] ss:$8 sps:$4 sm:$0xff]   ;;  %v3259_v6 = vld [vmem:[%s4412_s6 + $0xb4] ss:$8 sps:$4 sm:$0xff]  }
 0x1b1   :  { %1322 = vmatprep.subr.bf16.mxu1 %v3118_v61  ;;  %v3247_v61 = vld [vmem:[%s4412_s6 + $0x74] ss:$8 sps:$4 sm:$0xff]  }
 0x1b2   :  { %v984_v11 = vpack.c.bf16 %v981_v8, %v981_v8  ;;  %v3262_v8 = vld [vmem:[%s4412_s6 + $0xc4] ss:$8 sps:$4 sm:$0xff]  }
 0x1b4   :  { %1323 = vmatpush1.bf16.msra.mxu1 %v3116_v62  ;;  %v3245_v62 = vld [vmem:[%s4412_s6 + $0x70] ss:$8 sps:$4 sm:$0xff]  }
 0x1b5   :  { %1324 = vmatprep.subr.bf16.mxu1 %v3121_v63  ;;  %v3250_v63 = vld [vmem:[%s4412_s6 + $0x84] ss:$8 sps:$4 sm:$0xff]  }
 0x1b8   :  { %1325 = vmatpush1.bf16.msra.mxu1 %v3119_v1  ;;  %v3248_v1 = vld [vmem:[%s4412_s6 + $0x80] ss:$8 sps:$4 sm:$0xff]  }
 0x1b9   :  { %1326 = vmatprep.subr.bf16.mxu1 %v3124_v2  ;;  %v3253_v2 = vld [vmem:[%s4412_s6 + $0x94] ss:$8 sps:$4 sm:$0xff]  }
 0x1bc   :  { %1327 = vmatpush1.bf16.msra.mxu1 %v3122_v3  ;;  %v3251_v3 = vld [vmem:[%s4412_s6 + $0x90] ss:$8 sps:$4 sm:$0xff]  }
 0x1bd   :  { %1328 = vmatprep.subr.bf16.mxu1 %v3130_v4  ;;  %v3256_v4 = vld [vmem:[%s4412_s6 + $0xa4] ss:$8 sps:$4 sm:$0xff]  }
 0x1c0   :  { %1329 = vmatpush1.bf16.msra.mxu1 %v3128_v7  ;;  %v3257_v7 = vld [vmem:[%s4412_s6 + $0xb0] ss:$8 sps:$4 sm:$0xff]  }
 0x1c1   :  { %1866 = vmatprep.subr.bf16.mxu1 %v3136_v45  ;;  %v3260_v45 = vld [vmem:[%s4412_s6 + $0xc0] ss:$8 sps:$4 sm:$0xff]  }
 0x1c3   :  { %1347 = vmatmul.mubr.bf16.vlgmr.msra.gmra.mrb[8].mxu1 %v984_v11  ;;  %v3263_v11 = vld [vmem:[%s4412_s6 + $0xd0] ss:$8 sps:$4 sm:$0xff]  }
 0x1c4   :  { %1867 = vmatpush1.bf16.msra.mxu1 %v3134_v10  ;;  %1898 = vmatprep.mubr.bf16.mxu1 %v3648_v0  ;;  %v3152_v0 = vld [vmem:[%s4411_s5 + $0x130] ss:$8 sps:$4 sm:$0xff]   ;;  %v3265_v10 = vld [vmem:[%s4412_s6 + $0xd4] ss:$8 sps:$4 sm:$0xff]  }
 0x1c5   :  { %1868 = vmatprep.subr.bf16.mxu1 %v3142_v49  ;;  %v3268_v49 = vld [vmem:[%s4412_s6 + $0xe4] ss:$8 sps:$4 sm:$0xff]  }
 0x1c8   :  { %1869 = vmatpush1.bf16.msra.mxu1 %v3140_v12  ;;  %v3266_v12 = vld [vmem:[%s4412_s6 + $0xe0] ss:$8 sps:$4 sm:$0xff]  }
 0x1c9   :  { %1870 = vmatprep.subr.bf16.mxu1 %v3148_v13  ;;  %v3269_v13 = vld [vmem:[%s4412_s6 + $0xf0] ss:$8 sps:$4 sm:$0xff]  }
 0x1cc   :  { %1871 = vmatpush1.bf16.msra.mxu1 %v3146_v14  ;;  %v3271_v14 = vld [vmem:[%s4412_s6 + $0xf4] ss:$8 sps:$4 sm:$0xff]  }
 0x1cd   :  { %1872 = vmatprep.subr.bf16.mxu1 %v3154_v15 }
 0x1d0   :  { %1873 = vmatpush1.bf16.msra.mxu1 %v3152_v0 }
 0x1d1   :  { %1874 = vmatprep.subr.bf16.mxu1 %v3160_v16 }
 0x1d4   :  { %1875 = vmatpush1.bf16.msra.mxu1 %v3158_v17 }
 0x1d5   :  { %1876 = vmatprep.subr.bf16.mxu1 %v3166_v18 }
 0x1d8   :  { %1877 = vmatpush1.bf16.msra.mxu1 %v3164_v19 }
 0x1d9   :  { %1878 = vmatprep.subr.bf16.mxu1 %v3172_v21 }
 0x1dc   :  { %1879 = vmatpush1.bf16.msra.mxu1 %v3170_v22 }
 0x1dd   :  { %1880 = vmatprep.subr.bf16.mxu1 %v3178_v24 }
 0x1e0   :  { %1881 = vmatpush1.bf16.msra.mxu1 %v3176_v25 }
 0x1e1   :  { %1882 = vmatprep.subr.bf16.mxu1 %v3184_v26 }
 0x1e4   :  { %1883 = vmatpush1.bf16.msra.mxu1 %v3182_v27 }
 0x1e5   :  { %1884 = vmatprep.subr.bf16.mxu1 %v3190_v28 }
 0x1e8   :  { %1885 = vmatpush1.bf16.msra.mxu1 %v3188_v29 }
 0x1e9   :  { %1886 = vmatprep.subr.bf16.mxu1 %v3196_v30 }
 0x1ec   :  { %1887 = vmatpush1.bf16.msra.mxu1 %v3194_v31 }
 0x1ed   :  { %1888 = vmatprep.subr.bf16.mxu1 %v3202_v32 }
 0x1f0   :  { %1889 = vmatpush1.bf16.msra.mxu1 %v3200_v34 }
 0x1f1   :  { %1890 = vmatprep.subr.bf16.mxu1 %v3208_v38 }
 0x1f4   :  { %1891 = vmatpush1.bf16.msra.mxu1 %v3206_v35 }
 0x1f5   :  { %1892 = vmatprep.subr.bf16.mxu1 %v3214_v36 }
 0x1f8   :  { %1893 = vmatpush1.bf16.msra.mxu1 %v3212_v20 }
 0x1f9   :  { %1894 = vmatprep.subr.bf16.mxu1 %v3220_v23 }
 0x1fc   :  { %1895 = vmatpush1.bf16.msra.mxu1 %v3218_v37 }
 0x1fd   :  { %1896 = vmatprep.subr.bf16.mxu1 %v3223_v39 }
 0x200   :  { %1897 = vmatpush1.bf16.msra.mxu1 %v3221_v40 }
 0x203   :  { %1899 = vmatmul.mubr.bf16.vlgmr.msra.gmra.mrb[12].mxu1 %v3675_v9  ;;  %v3232_v9 = vld [vmem:[%s4412_s6 + $0x24] ss:$8 sps:$4 sm:$0xff]  }
 0x204   :  { %2125 = vmatprep.subr.bf16.mxu0 %v3232_v9 }
 0x205   :  { %2126 = vmatpush1.bf16.msra.mxu0 %v3230_v33 }
 0x206   :  { %2127 = vmatprep.subr.bf16.mxu0 %v3235_v46 }
 0x209   :  { %2128 = vmatpush1.bf16.msra.mxu0 %v3233_v47 }
 0x20a   :  { %2129 = vmatprep.subr.bf16.mxu0 %v3238_v48 }
 0x20d   :  { %2130 = vmatpush1.bf16.msra.mxu0 %v3236_v50 }
 0x20e   :  { %2131 = vmatprep.subr.bf16.mxu0 %v3241_v51 }
 0x211   :  { %2132 = vmatpush1.bf16.msra.mxu0 %v3239_v52 }
 0x212   :  { %2133 = vmatprep.subr.bf16.mxu0 %v3244_v59 }
 0x215   :  { %2134 = vmatpush1.bf16.msra.mxu0 %v3242_v60 }
 0x216   :  { %2135 = vmatprep.subr.bf16.mxu0 %v3247_v61 }
 0x219   :  { %2136 = vmatpush1.bf16.msra.mxu0 %v3245_v62  ;;  %v2743_v62 = vld [vmem:[%s4410_s4 + $0x2] ss:$4 sm:$0x3] }
 0x21a   :  { %2137 = vmatprep.subr.bf16.mxu0 %v3250_v63  ;;  %v1355_v63 = vld [vmem:[%s4410_s4] ss:$4 sm:$0x3] }
 0x21d   :  { %2138 = vmatpush1.bf16.msra.mxu0 %v3248_v1 }
 0x21e   :  { %2139 = vmatprep.subr.bf16.mxu0 %v3253_v2 }
 0x221   :  { %2140 = vmatpush1.bf16.msra.mxu0 %v3251_v3 }
 0x222   :  { %2141 = vmatprep.subr.bf16.mxu0 %v3256_v4 }
 0x225   :  { %2142 = vmatpush1.bf16.msra.mxu0 %v3254_v5  ;;  %v1498_v5 = vrot.slane %v2743_v62, %v3977_v56 }
 0x226   :  { %2143 = vmatprep.subr.bf16.mxu0 %v3259_v6  ;;  %v1406_v6 = vrot.slane %v1355_v63, %v3977_v56 }
 0x229   :  { %2144 = vmatpush1.bf16.msra.mxu0 %v3257_v7 }
 0x22a   :  { %2145 = vmatprep.subr.bf16.mxu0 %v3262_v8  ;;  %v1502_v8 = vrot.slane %v2743_v62, %v3979_v58  ;;  %v3295_v62 = vld [vmem:[%s4414_s8 + $0x74] ss:$8 sps:$4 sm:$0xff]  }
 0x22d   :  { %2146 = vmatpush1.bf16.msra.mxu0 %v3260_v45  ;;  %v2742_v45 = vld [vmem:[%s4410_s4 + $0x1] ss:$4 sm:$0x3] }
 0x22e   :  { %2147 = vmatprep.subr.bf16.mxu0 %v3265_v10  ;;  %v1410_v10 = vrot.slane %v1355_v63, %v3979_v58  ;;  %v3293_v63 = vld [vmem:[%s4414_s8 + $0x70] ss:$8 sps:$4 sm:$0xff]  }
 0x231   :  { %2148 = vmatpush1.bf16.msra.mxu0 %v3263_v11 }
 0x232   :  { %2149 = vmatprep.subr.bf16.mxu0 %v3268_v49 }
 0x235   :  { %2150 = vmatpush1.bf16.msra.mxu0 %v3266_v12  ;;  %v1419_v12 = vrot.slane %v2742_v45, %v3977_v56 }
 0x236   :  { %2151 = vmatprep.subr.bf16.mxu0 %v3271_v14 }
 0x239   :  { %2152 = vmatpush1.bf16.msra.mxu0 %v3269_v13 }
 0x23f   :  { %v4187_v53 = vpop.f32.mrb[4].mxu0 }
 0x240   :  { %v4189_v54 = vpop.f32.mrb[5].mxu0  ;;  %v1860_v11 = vadd.f32 %v4187_v53, %v1498_v5  ;;  %v3304_v5 = vld [vmem:[%s4414_s8 + $0xa4] ss:$8 sps:$4 sm:$0xff]  }
 0x241   :  { %v1863_v55 = vpop.f32.mrb[6].mxu0  ;;  %v1862_v13 = vadd.f32 %v4189_v54, %v1502_v8  ;;  %v3305_v8 = vld [vmem:[%s4414_s8 + $0xb0] ss:$8 sps:$4 sm:$0xff]  }
 0x242   :  { %v1864_v57 = vpop.f32.mrb[7].mxu0 }
 0x296   :  { %v1348_v15 = vpop.f32.mrb[8].mxu1 }
 0x297   :  { %v1358_v0 = vrot.slane %v1348_v15, 4  ;;  %v1372_v16 = vmul.f32 %v1348_v15, %v1348_v15  ;;  %v1350_v17 = vpop.f32.mrb[9].mxu1 }
 0x298   :  { %v1364_v18 = vrot.slane %v1350_v17, 4  ;;  %v1373_v19 = vmul.f32 %v1350_v17, %v1350_v17  ;;  %v1352_v21 = vpop.f32.mrb[10].mxu1 }
 0x299   :  { %v1353_v22 = vpop.f32.mrb[11].mxu1  ;;  %v1359_v24 = vadd.f32 %v1358_v0, %v1348_v15  ;;  %v1374_v25 = vrot.slane %v1372_v16, 4 }
 0x29a   :  { %v1365_v26 = vadd.f32 %v1364_v18, %v1350_v17  ;;  %v1380_v27 = vrot.slane %v1373_v19, 4 }
 0x29b   :  { %v1360_v28 = vrot.slane %v1359_v24, 2  ;;  %v1375_v29 = vadd.f32 %v1374_v25, %v1372_v16 }
 0x29c   :  { %v1366_v30 = vrot.slane %v1365_v26, 2  ;;  %v1381_v31 = vadd.f32 %v1380_v27, %v1373_v19 }
 0x29d   :  { %v1361_v32 = vadd.f32 %v1360_v28, %v1359_v24  ;;  %v1376_v34 = vrot.slane %v1375_v29, 2 }
 0x29e   :  { %v1367_v38 = vadd.f32 %v1366_v30, %v1365_v26  ;;  %v1382_v35 = vrot.slane %v1381_v31, 2 }
 0x29f   :  { %v1362_v36 = vrot.slane %v1361_v32, 1  ;;  %v1377_v20 = vadd.f32 %v1376_v34, %v1375_v29 }
 0x2a0   :  { %v1368_v23 = vrot.slane %v1367_v38, 1  ;;  %v1383_v37 = vadd.f32 %v1382_v35, %v1381_v31 }
 0x2a1   :  { %v1363_v39 = vadd.f32 %v1362_v36, %v1361_v32  ;;  %v1378_v40 = vrot.slane %v1377_v20, 1 }
 0x2a2   :  { %v1369_v41 = vadd.f32 %v1368_v23, %v1367_v38  ;;  %v1384_v42 = vrot.slane %v1383_v37, 1 }
 0x2a3   :  { %v1370_v43 = vmul.f32 0.125, %v1363_v39  ;;  %v1379_v44 = vadd.f32 %v1378_v40, %v1377_v20 }
 0x2a4   :  { %v1371_v9 = vmul.f32 0.125, %v1369_v41  ;;  %v1385_v33 = vadd.f32 %v1384_v42, %v1383_v37 }
 0x2a5   :  { %v1386_v46 = vmul.f32 0.125, %v1379_v44  ;;  %v1388_v47 = vmul.f32 %v1370_v43, %v1370_v43  ;;  %v1394_v2 = vsub.f32 %v1348_v15, %v1370_v43  ;;  %v1423_v15 = vrot.slane %v2742_v45, %v3979_v58  ;;  %v3274_v44 = vld [vmem:[%s4414_s8 + $0x4] ss:$8 sps:$4 sm:$0xff]  }
 0x2a6   :  { %v1387_v48 = vmul.f32 0.125, %v1385_v33  ;;  %v1389_v50 = vmul.f32 %v1371_v9, %v1371_v9  ;;  %v1395_v3 = vsub.f32 %v1350_v17, %v1371_v9  ;;  %v3272_v9 = vld [vmem:[%s4414_s8] ss:$8 sps:$4 sm:$0xff]   ;;  %2447 = vmatprep.subr.bf16.mxu1 %v3274_v44  ;;  %v3277_v33 = vld [vmem:[%s4414_s8 + $0x14] ss:$8 sps:$4 sm:$0xff]  }
 0x2a7   :  { %v1390_v51 = vsub.f32 %v1386_v46, %v1388_v47  ;;  %2448 = vmatpush1.bf16.msra.mxu1 %v3272_v9  ;;  %v3275_v46 = vld [vmem:[%s4414_s8 + $0x10] ss:$8 sps:$4 sm:$0xff]   ;;  %v3280_v47 = vld [vmem:[%s4414_s8 + $0x24] ss:$8 sps:$4 sm:$0xff]  }
 0x2a8   :  { %v1391_v52 = vsub.f32 %v1387_v48, %v1389_v50  ;;  %2449 = vmatprep.subr.bf16.mxu1 %v3277_v33  ;;  %v3278_v48 = vld [vmem:[%s4414_s8 + $0x20] ss:$8 sps:$4 sm:$0xff]   ;;  %v3283_v50 = vld [vmem:[%s4414_s8 + $0x34] ss:$8 sps:$4 sm:$0xff]   ;;  %v3310_v45 = vld [vmem:[%s4414_s8 + $0xc4] ss:$8 sps:$4 sm:$0xff]  }
 0x2a9   :  { %v1392_v55 = vmax.f32 %v1390_v51, 0.0  ;;  %v3281_v51 = vld [vmem:[%s4414_s8 + $0x30] ss:$8 sps:$4 sm:$0xff]  }
 0x2aa   :  { %v1393_v57 = vmax.f32 %v1391_v52, 0.0  ;;  %v3286_v52 = vld [vmem:[%s4414_s8 + $0x44] ss:$8 sps:$4 sm:$0xff]  }
 0x2ab   :  { %v1396_v59 = vadd.f32 1e-05, %v1392_v55  ;;  %2450 = vmatpush1.bf16.msra.mxu1 %v3275_v46  ;;  %v3284_v55 = vld [vmem:[%s4414_s8 + $0x40] ss:$8 sps:$4 sm:$0xff]  }
 0x2ac   :  { %v1397_v60 = vadd.f32 1e-05, %v1393_v57  ;;  %2451 = vmatprep.subr.bf16.mxu1 %v3280_v47  ;;  %v3289_v57 = vld [vmem:[%s4414_s8 + $0x54] ss:$8 sps:$4 sm:$0xff]  }
 0x2ad   :  { %3338 = vrsqrt.f32 %v1396_v59  ;;  %v3287_v59 = vld [vmem:[%s4414_s8 + $0x50] ss:$8 sps:$4 sm:$0xff]  }
 0x2ae   :  { %3340 = vrsqrt.f32 %v1397_v60  ;;  %v3292_v60 = vld [vmem:[%s4414_s8 + $0x64] ss:$8 sps:$4 sm:$0xff]  }
 0x2af   :  { %2452 = vmatpush1.bf16.msra.mxu1 %v3278_v48 }
 0x2b0   :  { %2453 = vmatprep.subr.bf16.mxu1 %v3283_v50 }
 0x2b3   :  { %2454 = vmatpush1.bf16.msra.mxu1 %v3281_v51 }
 0x2b4   :  { %2455 = vmatprep.subr.bf16.mxu1 %v3286_v52 }
 0x2b7   :  { %v3339_v61 = vpop.eup %3338  ;;  %2456 = vmatpush1.bf16.msra.mxu1 %v3284_v55 }
 0x2b8   :  { %v3341_v1 = vpop.eup %3340  ;;  %v1400_v4 = vmul.f32 %v3339_v61, %v1394_v2  ;;  %2457 = vmatprep.subr.bf16.mxu1 %v3289_v57  ;;  %v3290_v61 = vld [vmem:[%s4414_s8 + $0x60] ss:$8 sps:$4 sm:$0xff]  }
 0x2b9   :  { %v1401_v7 = vmul.f32 %v3341_v1, %v1395_v3  ;;  %v3298_v1 = vld [vmem:[%s4414_s8 + $0x84] ss:$8 sps:$4 sm:$0xff]   ;;  %v3296_v2 = vld [vmem:[%s4414_s8 + $0x80] ss:$8 sps:$4 sm:$0xff]   ;;  %v3301_v3 = vld [vmem:[%s4414_s8 + $0x94] ss:$8 sps:$4 sm:$0xff]  }
 0x2ba   :  { %v1413_v49 = vmul.f32 %v1406_v6, %v1400_v4  ;;  %v3299_v4 = vld [vmem:[%s4414_s8 + $0x90] ss:$8 sps:$4 sm:$0xff]   ;;  %v3302_v6 = vld [vmem:[%s4414_s8 + $0xa0] ss:$8 sps:$4 sm:$0xff]  }
 0x2bb   :  { %v1414_v14 = vmul.f32 %v1410_v10, %v1401_v7  ;;  %2458 = vmatpush1.bf16.msra.mxu1 %v3287_v59  ;;  %v3307_v7 = vld [vmem:[%s4414_s8 + $0xb4] ss:$8 sps:$4 sm:$0xff]   ;;  %v3308_v10 = vld [vmem:[%s4414_s8 + $0xc0] ss:$8 sps:$4 sm:$0xff]  }
 0x2bc   :  { %v1426_v16 = vadd.f32 %v1419_v12, %v1413_v49  ;;  %2459 = vmatprep.subr.bf16.mxu1 %v3292_v60  ;;  %v3311_v49 = vld [vmem:[%s4414_s8 + $0xd0] ss:$8 sps:$4 sm:$0xff]   ;;  %v3316_v12 = vld [vmem:[%s4414_s8 + $0xe4] ss:$8 sps:$4 sm:$0xff]  }
 0x2bd   :  { %v1427_v19 = vadd.f32 %v1423_v15, %v1414_v14  ;;  %v3319_v14 = vld [vmem:[%s4414_s8 + $0xf4] ss:$8 sps:$4 sm:$0xff]   ;;  %v3317_v15 = vld [vmem:[%s4414_s8 + $0xf0] ss:$8 sps:$4 sm:$0xff]  }
 0x2bf   :  { %2460 = vmatpush1.bf16.msra.mxu1 %v3290_v61 }
 0x2c0   :  { %2461 = vmatprep.subr.bf16.mxu1 %v3295_v62  ;;  %v2162_v62 = vld [vmem:[%s4413_s7] ss:$2 sm:$0x3] }
 0x2c3   :  { %2462 = vmatpush1.bf16.msra.mxu1 %v3293_v63  ;;  %v2840_v63 = vld [vmem:[%s4413_s7 + $0x1] ss:$2 sm:$0x3] }
 0x2c4   :  { %2463 = vmatprep.subr.bf16.mxu1 %v3298_v1 }
 0x2c7   :  { %2464 = vmatpush1.bf16.msra.mxu1 %v3296_v2  ;;  %v2213_v2 = vrot.slane %v2162_v62, %v3977_v56 }
 0x2c8   :  { %2465 = vmatprep.subr.bf16.mxu1 %v3301_v3 }
 0x2cb   :  { %2466 = vmatpush1.bf16.msra.mxu1 %v3299_v4 }
 0x2cc   :  { %2467 = vmatprep.subr.bf16.mxu1 %v3304_v5  ;;  %v2217_v5 = vrot.slane %v2162_v62, %v3979_v58 }
 0x2cf   :  { %2468 = vmatpush1.bf16.msra.mxu1 %v3302_v6 }
 0x2d0   :  { %2469 = vmatprep.subr.bf16.mxu1 %v3307_v7 }
 0x2d3   :  { %2470 = vmatpush1.bf16.msra.mxu1 %v3305_v8  ;;  %v2226_v8 = vrot.slane %v2840_v63, %v3977_v56 }
 0x2d4   :  { %2471 = vmatprep.subr.bf16.mxu1 %v3310_v45 }
 0x2d6   :  { %v1900_v0 = vpop.f32.mrb[12].mxu1 }
 0x2d7   :  { %v1901_v17 = vadd.f32 %v1900_v0, %v1860_v11  ;;  %v1902_v18 = vpop.f32.mrb[13].mxu1  ;;  %v3313_v11 = vld [vmem:[%s4414_s8 + $0xd4] ss:$8 sps:$4 sm:$0xff]   ;;  %2472 = vmatpush1.bf16.msra.mxu1 %v3308_v10  ;;  %v2230_v10 = vrot.slane %v2840_v63, %v3979_v58 }
 0x2d8   :  { %v1903_v21 = vadd.f32 %v1902_v18, %v1862_v13  ;;  %v1904_v22 = vpop.f32.mrb[14].mxu1  ;;  %2473 = vmatprep.subr.bf16.mxu1 %v3313_v11  ;;  %v3314_v13 = vld [vmem:[%s4414_s8 + $0xe0] ss:$8 sps:$4 sm:$0xff]  }
 0x2d9   :  { %v1907_v24 = vadd.f32 %v1901_v17, %v1426_v16  ;;  %v1905_v25 = vpop.f32.mrb[15].mxu1 }
 0x2da   :  { %v1908_v26 = vadd.f32 %v1903_v21, %v1427_v19 }
 0x2db   :  { %v1909_v27 = vmin.f32 %v1907_v24, 20.0  ;;  %2474 = vmatpush1.bf16.msra.mxu1 %v3311_v49 }
 0x2dc   :  { %v1910_v53 = vmin.f32 %v1908_v26, 20.0  ;;  %2475 = vmatprep.subr.bf16.mxu1 %v3316_v12 }
 0x2dd   :  { %v1911_v28 = vmul.f32 1.442695, %v1909_v27 }
 0x2de   :  { %v1913_v29 = vmul.f32 1.442695, %v1910_v53 }
 0x2df   :  { %3342 = vpow2.f32 %v1911_v28  ;;  %2476 = vmatpush1.bf16.msra.mxu1 %v3314_v13 }
 0x2e0   :  { %3344 = vpow2.f32 %v1913_v29  ;;  %2477 = vmatprep.subr.bf16.mxu1 %v3319_v14 }
 0x2e3   :  { %2478 = vmatpush1.bf16.msra.mxu1 %v3317_v15 }
 0x2e9   :  { %v3343_v54 = vpop.eup %3342 }
 0x2ea   :  { %v3345_v30 = vpop.eup %3344  ;;  %v1915_v31 = vadd.f32 2.0, %v3343_v54 }
 0x2eb   :  { %v1916_v32 = vadd.f32 2.0, %v3345_v30 }
 0x2ec   :  { %v1917_v34 = vmul.f32 %v3343_v54, %v1915_v31 }
 0x2ed   :  { %v1918_v38 = vmul.f32 %v3345_v30, %v1916_v32 }
 0x2ee   :  { %v1921_v35 = vadd.f32 2.0, %v1917_v34  ;;  %v1919_v20 = vmul.f32 %v1917_v34, %v1907_v24 }
 0x2ef   :  { %v1922_v36 = vadd.f32 2.0, %v1918_v38  ;;  %v1920_v37 = vmul.f32 %v1918_v38, %v1908_v26 }
 0x2f0   :  { %3346 = vrcp.f32 %v1921_v35 }
 0x2f1   :  { %3348 = vrcp.f32 %v1922_v36 }
 0x2fa   :  { %v3347_v23 = vpop.eup %3346 }
 0x2fb   :  { %v3349_v39 = vpop.eup %3348  ;;  %v4268_v40 = vmul.f32 %v3347_v23, %v1919_v20 }
 0x2fc   :  { %v4270_v41 = vmul.f32 %v3349_v39, %v1920_v37 }
 0x2fd   :  { %v1927_v43 = vpack.c.bf16 %v4268_v40, %v4268_v40 }
 0x2fe   :  { %v1928_v42 = vpack.c.bf16 %v4270_v41, %v4270_v41 }
 0x300   :  { %2153 = vmatprep.mubr.bf16.mxu0 %v1928_v42 }
 0x301   :  { %2154 = vmatmul.mubr.bf16.vlgmr.msra.gmra.mrb[8].mxu0 %v1927_v43 }
 0x3d4   :  { %v2155_v0 = vpop.f32.mrb[8].mxu0 }
 0x3d5   :  { %v2165_v16 = vrot.slane %v2155_v0, 4  ;;  %v2179_v17 = vmul.f32 %v2155_v0, %v2155_v0  ;;  %v2157_v18 = vpop.f32.mrb[9].mxu0 }
 0x3d6   :  { %v2171_v19 = vrot.slane %v2157_v18, 4  ;;  %v2180_v21 = vmul.f32 %v2157_v18, %v2157_v18  ;;  %v2159_v22 = vpop.f32.mrb[10].mxu0 }
 0x3d7   :  { %v2166_v24 = vadd.f32 %v2165_v16, %v2155_v0  ;;  %v2181_v25 = vrot.slane %v2179_v17, 4  ;;  %v2160_v26 = vpop.f32.mrb[11].mxu0 }
 0x3d8   :  { %v2172_v27 = vadd.f32 %v2171_v19, %v2157_v18  ;;  %v2187_v53 = vrot.slane %v2180_v21, 4 }
 0x3d9   :  { %v2167_v28 = vrot.slane %v2166_v24, 2  ;;  %v2182_v29 = vadd.f32 %v2181_v25, %v2179_v17 }
 0x3da   :  { %v2173_v54 = vrot.slane %v2172_v27, 2  ;;  %v2188_v30 = vadd.f32 %v2187_v53, %v2180_v21 }
 0x3db   :  { %v2168_v31 = vadd.f32 %v2167_v28, %v2166_v24  ;;  %v2183_v32 = vrot.slane %v2182_v29, 2 }
 0x3dc   :  { %v2174_v34 = vadd.f32 %v2173_v54, %v2172_v27  ;;  %v2189_v38 = vrot.slane %v2188_v30, 2 }
 0x3dd   :  { %v2169_v35 = vrot.slane %v2168_v31, 1  ;;  %v2184_v36 = vadd.f32 %v2183_v32, %v2182_v29 }
 0x3de   :  { %v2175_v20 = vrot.slane %v2174_v34, 1  ;;  %v2190_v23 = vadd.f32 %v2189_v38, %v2188_v30 }
 0x3df   :  { %v2170_v37 = vadd.f32 %v2169_v35, %v2168_v31  ;;  %v2185_v39 = vrot.slane %v2184_v36, 1 }
 0x3e0   :  { %v2176_v42 = vadd.f32 %v2175_v20, %v2174_v34  ;;  %v2191_v43 = vrot.slane %v2190_v23, 1 }
 0x3e1   :  { %v2177_v44 = vmul.f32 0.125, %v2170_v37  ;;  %v2186_v9 = vadd.f32 %v2185_v39, %v2184_v36 }
 0x3e2   :  { %v2178_v33 = vmul.f32 0.125, %v2176_v42  ;;  %v2192_v46 = vadd.f32 %v2191_v43, %v2190_v23 }
 0x3e3   :  { %v2193_v47 = vmul.f32 0.125, %v2186_v9  ;;  %v2195_v48 = vmul.f32 %v2177_v44, %v2177_v44  ;;  %v2201_v1 = vsub.f32 %v2155_v0, %v2177_v44 }
 0x3e4   :  { %v2194_v50 = vmul.f32 0.125, %v2192_v46  ;;  %v2196_v51 = vmul.f32 %v2178_v33, %v2178_v33  ;;  %v2202_v4 = vsub.f32 %v2157_v18, %v2178_v33 }
 0x3e5   :  { %v2197_v52 = vsub.f32 %v2193_v47, %v2195_v48 }
 0x3e6   :  { %v2198_v55 = vsub.f32 %v2194_v50, %v2196_v51 }
 0x3e7   :  { %v2199_v57 = vmax.f32 %v2197_v52, 0.0 }
 0x3e8   :  { %v2200_v59 = vmax.f32 %v2198_v55, 0.0 }
 0x3e9   :  { %v2203_v60 = vadd.f32 1e-05, %v2199_v57 }
 0x3ea   :  { %v2204_v61 = vadd.f32 1e-05, %v2200_v59 }
 0x3eb   :  { %3350 = vrsqrt.f32 %v2203_v60 }
 0x3ec   :  { %3352 = vrsqrt.f32 %v2204_v61 }
 0x3f5   :  { %v3351_v3 = vpop.eup %3350 }
 0x3f6   :  { %v3353_v6 = vpop.eup %3352  ;;  %v2207_v7 = vmul.f32 %v3351_v3, %v2201_v1 }
 0x3f7   :  { %v2208_v45 = vmul.f32 %v3353_v6, %v2202_v4 }
 0x3f8   :  { %v2220_v11 = vmul.f32 %v2213_v2, %v2207_v7 }
 0x3f9   :  { %v2221_v49 = vmul.f32 %v2217_v5, %v2208_v45 }
 0x3fa   :  { %v2233_v12 = vadd.f32 %v2226_v8, %v2220_v11 }
 0x3fb   :  { %v2234_v13 = vadd.f32 %v2230_v10, %v2221_v49 }
 0x3fc   :  { %v2235_v14 = vmin.f32 %v2233_v12, 20.0 }
 0x3fd   :  { %v2236_v15 = vmin.f32 %v2234_v13, 20.0 }
 0x3fe   :  { %v2237_v0 = vmul.f32 1.442695, %v2235_v14 }
 0x3ff   :  { %v2239_v16 = vmul.f32 1.442695, %v2236_v15 }
 0x400   :  { %3354 = vpow2.f32 %v2237_v0  ;;  %v2488_v0 = vld [vmem:[%s4415_s9] ss:$2 sm:$0x3] }
 0x401   :  { %3356 = vpow2.f32 %v2239_v16  ;;  %v2873_v16 = vld [vmem:[%s4415_s9 + $0x1] ss:$2 sm:$0x3]  ;;  %s3399_s9 = smov [#allocation2]  }
 0x402   :  { %s2589_s16 = sshll.u32 %s3399_s9, 4  ;;  %s2590_s16 = int_to_ptr.vmem [resolvable:$true] %s2589_s16 }
 0x403   :  { %s3374_s17 = scalar_lea.vmem %s2590_s16, 256  ;;  %p3379_p1 = scmp.lt.s32.totalorder %s2590_s16, %s2590_s16 }
 0x404   :  { %p3375_p0 = scmp.ne.s32.totalorder %s2590_s16, %s3374_s17  ;;  %p3380_p2 = scmp.lt.s32.totalorder %s3374_s17, %s3374_s17 }
 0x406   :  { %p3381_p3 = por %p3380_p2, %p3379_p1 }
 0x408   :  { %p3382_p4 = pnand %p3381_p3, %p3375_p0 }
 0x40a   :  { %v3355_v17 = vpop.eup %3354 }
 0x40b   :  { %v3357_v18 = vpop.eup %3356  ;;  %v2241_v19 = vadd.f32 2.0, %v3355_v17 }
 0x40c   :  { %v2242_v21 = vadd.f32 2.0, %v3357_v18 }
 0x40d   :  { %v2243_v22 = vmul.f32 %v3355_v17, %v2241_v19 }
 0x40e   :  { %v2244_v24 = vmul.f32 %v3357_v18, %v2242_v21  ;;  %v2539_v18 = vrot.slane %v2488_v0, %v3977_v56 }
 0x40f   :  { %v2247_v25 = vadd.f32 2.0, %v2243_v22  ;;  %v2245_v27 = vmul.f32 %v2243_v22, %v2233_v12  ;;  %v2543_v22 = vrot.slane %v2488_v0, %v3979_v58 }
 0x410   :  { %v2248_v26 = vadd.f32 2.0, %v2244_v24  ;;  %v2246_v28 = vmul.f32 %v2244_v24, %v2234_v13 }
 0x411   :  { %3358 = vrcp.f32 %v2247_v25 }
 0x412   :  { %3360 = vrcp.f32 %v2248_v26  ;;  %v2552_v26 = vrot.slane %v2873_v16, %v3977_v56 }
 0x41b   :  { %v3359_v53 = vpop.eup %3358 }
 0x41c   :  { %v3361_v29 = vpop.eup %3360  ;;  %v2251_v54 = vmul.f32 %v3359_v53, %v2245_v27  ;;  %v2556_v53 = vrot.slane %v2873_v16, %v3979_v58 }
 0x41d   :  { %v2252_v30 = vmul.f32 %v3361_v29, %v2246_v28 }
 0x41e   :  { %v2253_v32 = vpack.c.bf16 %v2251_v54, %v2251_v54 }
 0x41f   :  { %v2254_v31 = vpack.c.bf16 %v2252_v30, %v2252_v30 }
 0x421   :  { %2479 = vmatprep.mubr.bf16.mxu1 %v2254_v31 }
 0x422   :  { %2480 = vmatmul.mubr.bf16.vlgmr.msra.gmra.mrb[16].mxu1 %v2253_v32 }
 0x4f5   :  { %v2481_v34 = vpop.f32.mrb[16].mxu1 }
 0x4f6   :  { %v2491_v38 = vrot.slane %v2481_v34, 4  ;;  %v2505_v35 = vmul.f32 %v2481_v34, %v2481_v34  ;;  %v2483_v36 = vpop.f32.mrb[17].mxu1 }
 0x4f7   :  { %v2497_v20 = vrot.slane %v2483_v36, 4  ;;  %v2506_v23 = vmul.f32 %v2483_v36, %v2483_v36  ;;  %v2485_v37 = vpop.f32.mrb[18].mxu1 }
 0x4f8   :  { %v2492_v39 = vadd.f32 %v2491_v38, %v2481_v34  ;;  %v2507_v42 = vrot.slane %v2505_v35, 4  ;;  %v2486_v43 = vpop.f32.mrb[19].mxu1 }
 0x4f9   :  { %v2498_v44 = vadd.f32 %v2497_v20, %v2483_v36  ;;  %v2513_v9 = vrot.slane %v2506_v23, 4 }
 0x4fa   :  { %v2493_v33 = vrot.slane %v2492_v39, 2  ;;  %v2508_v46 = vadd.f32 %v2507_v42, %v2505_v35 }
 0x4fb   :  { %v2499_v47 = vrot.slane %v2498_v44, 2  ;;  %v2514_v48 = vadd.f32 %v2513_v9, %v2506_v23 }
 0x4fc   :  { %v2494_v50 = vadd.f32 %v2493_v33, %v2492_v39  ;;  %v2509_v51 = vrot.slane %v2508_v46, 2 }
 0x4fd   :  { %v2500_v52 = vadd.f32 %v2499_v47, %v2498_v44  ;;  %v2515_v55 = vrot.slane %v2514_v48, 2 }
 0x4fe   :  { %v2495_v57 = vrot.slane %v2494_v50, 1  ;;  %v2510_v59 = vadd.f32 %v2509_v51, %v2508_v46 }
 0x4ff   :  { %v2501_v60 = vrot.slane %v2500_v52, 1  ;;  %v2516_v61 = vadd.f32 %v2515_v55, %v2514_v48 }
 0x500   :  { %v2496_v62 = vadd.f32 %v2495_v57, %v2494_v50  ;;  %v2511_v63 = vrot.slane %v2510_v59, 1 }
 0x501   :  { %v2502_v1 = vadd.f32 %v2501_v60, %v2500_v52  ;;  %v2517_v2 = vrot.slane %v2516_v61, 1 }
 0x502   :  { %v2503_v3 = vmul.f32 0.125, %v2496_v62  ;;  %v2512_v4 = vadd.f32 %v2511_v63, %v2510_v59 }
 0x503   :  { %v2504_v5 = vmul.f32 0.125, %v2502_v1  ;;  %v2518_v6 = vadd.f32 %v2517_v2, %v2516_v61 }
 0x504   :  { %v2519_v7 = vmul.f32 0.125, %v2512_v4  ;;  %v2521_v8 = vmul.f32 %v2503_v3, %v2503_v3  ;;  %v2527_v17 = vsub.f32 %v2481_v34, %v2503_v3 }
 0x505   :  { %v2520_v45 = vmul.f32 0.125, %v2518_v6  ;;  %v2522_v10 = vmul.f32 %v2504_v5, %v2504_v5  ;;  %v2528_v21 = vsub.f32 %v2483_v36, %v2504_v5 }
 0x506   :  { %v2523_v11 = vsub.f32 %v2519_v7, %v2521_v8 }
 0x507   :  { %v2524_v49 = vsub.f32 %v2520_v45, %v2522_v10 }
 0x508   :  { %v2525_v12 = vmax.f32 %v2523_v11, 0.0 }
 0x509   :  { %v2526_v13 = vmax.f32 %v2524_v49, 0.0 }
 0x50a   :  { %v2529_v14 = vadd.f32 1e-05, %v2525_v12 }
 0x50b   :  { %v2530_v15 = vadd.f32 1e-05, %v2526_v13 }
 0x50c   :  { %3362 = vrsqrt.f32 %v2529_v14 }
 0x50d   :  { %3364 = vrsqrt.f32 %v2530_v15 }
 0x516   :  { %v3363_v19 = vpop.eup %3362 }
 0x517   :  { %v3365_v24 = vpop.eup %3364  ;;  %v2533_v25 = vmul.f32 %v3363_v19, %v2527_v17 }
 0x518   :  { %v2534_v27 = vmul.f32 %v3365_v24, %v2528_v21 }
 0x519   :  { %v2546_v28 = vmul.f32 %v2539_v18, %v2533_v25 }
 0x51a   :  { %v2547_v29 = vmul.f32 %v2543_v22, %v2534_v27 }
 0x51b   :  { %v2559_v54 = vadd.f32 %v2552_v26, %v2546_v28 }
 0x51c   :  { %v2560_v30 = vadd.f32 %v2556_v53, %v2547_v29 }
 0x51d   :  { %v2561_v31 = vadd.f32 %v2559_v54, %v4268_v40 }
 0x51e   :  { %v2562_v32 = vadd.f32 %v2560_v30, %v4270_v41 }
 0x51f   :  { %v2563_v34 = vmin.f32 %v2561_v31, 20.0 }
 0x520   :  { %v2564_v38 = vmin.f32 %v2562_v32, 20.0 }
 0x521   :  { %v2565_v35 = vmul.f32 1.442695, %v2563_v34 }
 0x522   :  { %v2567_v36 = vmul.f32 1.442695, %v2564_v38 }
 0x523   :  { %3366 = vpow2.f32 %v2565_v35 }
 0x524   :  { %3368 = vpow2.f32 %v2567_v36 }
 0x52d   :  { %v3367_v20 = vpop.eup %3366 }
 0x52e   :  { %v3369_v23 = vpop.eup %3368  ;;  %v2569_v56 = vadd.f32 2.0, %v3367_v20 }
 0x52f   :  { %v2570_v37 = vadd.f32 2.0, %v3369_v23 }
 0x530   :  { %v2571_v39 = vmul.f32 %v3367_v20, %v2569_v56 }
 0x531   :  { %v2572_v58 = vmul.f32 %v3369_v23, %v2570_v37 }
 0x532   :  { %v2575_v42 = vadd.f32 2.0, %v2571_v39  ;;  %v2573_v44 = vmul.f32 %v2571_v39, %v2561_v31 }
 0x533   :  { %v2576_v43 = vadd.f32 2.0, %v2572_v58  ;;  %v2574_v41 = vmul.f32 %v2572_v58, %v2562_v32 }
 0x534   :  { %3370 = vrcp.f32 %v2575_v42 }
 0x535   :  { %3372 = vrcp.f32 %v2576_v43 }
 0x53e   :  { %v3371_v40 = vpop.eup %3370 }
 0x53f   :  { %v3373_v9 = vpop.eup %3372  ;;  %v2579_v33 = vmul.f32 %v3371_v40, %v2573_v44 }
 0x540   :  { %v2580_v46 = vmul.f32 %v3373_v9, %v2574_v41 }
 0x541   :  { %2581 = vst [vmem:[#allocation2] sm:$0xff] %v2579_v33 }
 0x542   :  { %2582 = vst [vmem:[#allocation2 + $0x8] sm:$0xff] %v2580_v46 }
 0x543   :  { %3385 = shalt.err (!%p3382_p4)
}
 0x544   :  { %s3386_s20 = scalar_lea.hbm %s4416_s10, 256 }
 0x545   :  { %p3387_p5 = scmp.ne.s32.totalorder %s4416_s10, %s3386_s20  ;;  %p3390_p6 = scmp.lt.u32.totalorder %s3386_s20, %s4416_s10 }
 0x547   :  { %p3392_p7 = pnand %p3390_p6, %p3387_p5 }
 0x549   :  { %3395 = shalt.err (!%p3392_p7)
}
 0x54a   :  { %2592 = dma.vmem_to_hbm [thread:$0]  %s2590_s16, 256, %s4416_s10, [#allocation3]  }
 0x54b   :  { %3396 = dma.done.wait [#allocation3], 256  }
 0x54c   :  { %3397 = vsyncadd [#allocation3], 4294967040 }
 0x54d   :  { %2596 = vsyncpa [#allocation3], 1 }

</bundles_post_ra>
